<compile_context>
chip_gen: v5e
topology: v5e:2x2
jax: 0.10.0
libtpu: 0.0.40
codegen_flags: <defaults>
</compile_context>

<pallas_src>
import jax
import jax.numpy as jnp
from jax import lax
from jax.experimental import pallas as pl
from jax.experimental.pallas import tpu as pltpu

# ----------------------------- configuration ---------------------------------
B = 2          # batch
C = 3          # image channels (ViT patch-embed conv expects 3)
IMG = 32       # image height/width
PATCH = 16     # patch size (the "/16" in ViT-B/16)
D = 64         # hidden dim      (768 in the real model)
HEADS = 4      # attention heads (12 in the real model)
DH = D // HEADS
MLP = 128      # MLP dim         (3072 in the real model)
LAYERS = 2     # encoder layers  (12 in the real model)
EPS = 1e-6     # torchvision ViT uses LayerNorm(eps=1e-6)

CPP = C * PATCH * PATCH        # flattened patch length (768)
NPATCH = (IMG // PATCH) ** 2   # 4
SEQ = NPATCH + 1               # +CLS = 5
SCALE = 1.0 / float(DH) ** 0.5


# ----------------------------- kernel helpers ---------------------------------
def _layernorm(x, g, b):
    mu = jnp.mean(x, axis=-1, keepdims=True)
    xc = x - mu
    var = jnp.mean(xc * xc, axis=-1, keepdims=True)
    return xc * jax.lax.rsqrt(var + EPS) * g + b


def _erf(x):
    # Abramowitz & Stegun 7.1.26 (|err| < 1.5e-7); matches torch's exact-erf GELU to
    # float32 noise using only proven Mosaic lowerings.  The divide goes through
    # pl.reciprocal (exact); approx=True would move it to the EUP vrcp at ~1e-4 error.
    a1, a2, a3, a4, a5 = 0.254829592, -0.284496736, 1.421413741, -1.453152027, 1.061405429
    p = 0.3275911
    ax = jnp.abs(x)
    t = pl.reciprocal(1.0 + p * ax, approx=False)
    poly = ((((a5 * t + a4) * t + a3) * t + a2) * t + a1) * t
    y = 1.0 - poly * jnp.exp(-ax * ax)
    return jnp.where(x < 0.0, -y, y)


def _gelu(x):
    # Exact (erf-based) GELU, matching torch nn.GELU() default.
    return 0.5 * x * (1.0 + _erf(x * 0.7071067811865475))


# ----------------------------- fused Pallas kernel -----------------------------
def vit_kernel(pe_ref, tokbias_ref, conv_w_ref,
               ln1g_ref, ln1b_ref, wq_ref, bq_ref, wk_ref, bk_ref,
               wv_ref, bv_ref, wo_ref, bo_ref, ln2g_ref, ln2b_ref,
               w1_ref, b1_ref, w2_ref, b2_ref, lnfg_ref, lnfb_ref,
               out_ref, x_ref):
    f32 = jnp.float32
    l = pl.program_id(1)

    # ---- layer 0 of each image: build the residual stream in VMEM scratch.  Row 0 of
    #      the patch matrix is a zero "CLS patch", so one matmul + the precomputed
    #      additive bias (cls / pos / conv_b) yields the whole (SEQ, D) token stream.
    @pl.when(l == 0)
    def _():
        x_ref[...] = (jnp.dot(pe_ref[0], conv_w_ref[...], preferred_element_type=f32)
                      + tokbias_ref[...])

    x = x_ref[...]

    # -- multi-head self-attention (pre-LN); per-image, so no attention mask needed --
    y = _layernorm(x, ln1g_ref[0], ln1b_ref[0])
    q = jnp.dot(y, wq_ref[0], preferred_element_type=f32) + bq_ref[0]   # SCALE folded in
    k = jnp.dot(y, wk_ref[0], preferred_element_type=f32) + bk_ref[0]
    v = jnp.dot(y, wv_ref[0], preferred_element_type=f32) + bv_ref[0]

    head_outs = []
    for h in range(HEADS):                     # static unroll over heads (HEADS=4)
        c0 = h * DH
        qh = q[:, c0:c0 + DH]
        kh = k[:, c0:c0 + DH]
        vh = v[:, c0:c0 + DH]
        # q @ k^T without an explicit transpose: contract the last dims directly.
        s = lax.dot_general(qh, kh, (((1,), (1,)), ((), ())),
                            preferred_element_type=f32)               # (SEQ, SEQ)
        s = s - jnp.max(s, axis=-1, keepdims=True)
        e = jnp.exp(s)
        p = e * pl.reciprocal(jnp.sum(e, axis=-1, keepdims=True), approx=False)
        head_outs.append(jnp.dot(p, vh, preferred_element_type=f32))  # (SEQ, DH)
    o = jnp.concatenate(head_outs, axis=-1)                           # (SEQ, D)
    x = x + jnp.dot(o, wo_ref[0], preferred_element_type=f32) + bo_ref[0]

    # -- MLP (pre-LN); dropout p=0.0 => identity --
    z = _layernorm(x, ln2g_ref[0], ln2b_ref[0])
    h1 = _gelu(jnp.dot(z, w1_ref[0], preferred_element_type=f32) + b1_ref[0])
    x = x + jnp.dot(h1, w2_ref[0], preferred_element_type=f32) + b2_ref[0]

    x_ref[...] = x        # residual stream stays on-chip across layer grid steps

    # ---- after the last layer: final LayerNorm on the CLS row only, single store.
    #      Exact because LayerNorm is per-token and encoder.heads == Identity.
    @pl.when(l == pl.num_programs(1) - 1)
    def _():
        cls = x[0:1, :]                                                # (1, D)
        out_ref[0] = _layernorm(cls, lnfg_ref[...], lnfb_ref[...]).astype(out_ref.dtype)


# ----------------------------- wrapper (glue, plain JAX) -----------------------
_STACKED = ("ln1_g", "ln1_b", "wq", "bq", "wk", "bk", "wv", "bv", "wo", "bo",
            "ln2_g", "ln2_b", "w1", "b1", "w2", "b2")


def extract_patches(x):
    """NCHW image -> (B, N, C*P*P); identical ordering to Conv2d(stride=P) + flatten."""
    b, c, hh, ww = x.shape
    gh, gw = hh // PATCH, ww // PATCH
    x = x.reshape(b, c, gh, PATCH, gw, PATCH)
    x = x.transpose(0, 2, 4, 1, 3, 5)            # (B, gh, gw, C, ph, pw)
    return x.reshape(b, gh * gw, CPP)


@jax.jit
def vit_forward(x, params):
    """Equivalent of ViT_b_16_ImageNet.forward (feature_extractor=True, eval mode)."""
    # --- layout plumbing on tiny tensors (outside the kernel) ----------------------
    patches = extract_patches(x)                                      # (B, N, CPP)
    # Zero "patch" for the CLS slot so the in-kernel patch matmul + additive bias
    # produces the full token stream (cls + pos for row 0, conv_b + pos for patches).
    pe_in = jnp.concatenate(
        [jnp.zeros((B, 1, CPP), x.dtype), patches], axis=1)           # (B, SEQ, CPP)
    token_bias = jnp.concatenate(
        [params["cls"] + params["pos"][:1],                           # CLS row
         params["conv_b"] + params["pos"][1:]], axis=0)               # patch rows (SEQ, D)

    def per_layer_spec(full_shape):
        # stacked (LAYERS, ...) weight -> stream one layer slice per l grid step
        return pl.BlockSpec((1,) + full_shape,
                            lambda b, l, n=len(full_shape): (l,) + (0,) * n)

    in_specs = [
        pl.BlockSpec((1, SEQ, CPP), lambda b, l: (b, 0, 0)),          # pe_in (per image)
        pl.BlockSpec((SEQ, D), lambda b, l: (0, 0)),                  # token_bias
        pl.BlockSpec((CPP, D), lambda b, l: (0, 0)),                  # conv_w
        *[per_layer_spec(params[k].shape[1:]) for k in _STACKED],     # streamed weights
        pl.BlockSpec((1, D), lambda b, l: (0, 0)),                    # lnf_g
        pl.BlockSpec((1, D), lambda b, l: (0, 0)),                    # lnf_b
    ]
    out_specs = pl.BlockSpec((1, 1, D), lambda b, l: (b, 0, 0))       # CLS features

    out = pl.pallas_call(
        vit_kernel,
        out_shape=jax.ShapeDtypeStruct((B, 1, D), jnp.float32),
        grid_spec=pltpu.PrefetchScalarGridSpec(
            num_scalar_prefetch=0,
            grid=(B, LAYERS),
            in_specs=in_specs,
            out_specs=out_specs,
            scratch_shapes=[pltpu.VMEM((SEQ, D), jnp.float32)]),      # residual stream
        compiler_params=pltpu.CompilerParams(
            dimension_semantics=("parallel", "arbitrary"),
            vmem_limit_bytes=32 * 1024 * 1024),
    )(pe_in, token_bias, params["conv_w"],
      *[params[k] for k in _STACKED],
      params["lnf_g"], params["lnf_b"])
    return out.reshape(B, D)


# ----------------------------- parameter init ---------------------------------
def init_params(key):
    # TODO(synk): the real module loads IMAGENET1K_V1 pretrained weights; here the
    # parameters are synthetic deterministic initializations of the same structure.
    # (Real conv_proj weight (D, C, P, P) would be reshaped to (D, CPP).T for "conv_w";
    # for real scale, store the streamed weights as bf16 on v7x.)
    keys = jax.random.split(key, 4 + LAYERS)

    def nrm(k, shape, scale=0.02):
        return scale * jax.random.normal(k, shape, dtype=jnp.float32)

    params = {
        "conv_w": nrm(keys[0], (CPP, D)),       # conv_proj as a matmul, stored [in, out]
        "conv_b": nrm(keys[1], (1, D)),
        "cls":    nrm(keys[2], (1, D)),
        "pos":    nrm(keys[3], (SEQ, D)),
        "lnf_g":  jnp.ones((1, D), jnp.float32),
        "lnf_b":  jnp.zeros((1, D), jnp.float32),
        "ln1_g":  jnp.ones((LAYERS, 1, D), jnp.float32),
        "ln1_b":  jnp.zeros((LAYERS, 1, D), jnp.float32),
        "ln2_g":  jnp.ones((LAYERS, 1, D), jnp.float32),
        "ln2_b":  jnp.zeros((LAYERS, 1, D), jnp.float32),
    }
    shapes = {"wq": (D, D), "bq": (1, D), "wk": (D, D), "bk": (1, D),
              "wv": (D, D), "bv": (1, D), "wo": (D, D), "bo": (1, D),
              "w1": (D, MLP), "b1": (1, MLP), "w2": (MLP, D), "b2": (1, D)}
    per_layer = {name: [] for name in shapes}
    for l in range(LAYERS):
        lk = jax.random.split(keys[4 + l], len(shapes))
        for i, name in enumerate(shapes):
            w = nrm(lk[i], shapes[name])
            if name in ("wq", "bq"):
                w = w * SCALE        # fold the 1/sqrt(DH) attention scale into wq / bq
            per_layer[name].append(w)
    for name, vals in per_layer.items():
        params[name] = jnp.stack(vals, axis=0)      # stacked (LAYERS, ...)
    return params


# ----------------------------- main --------------------------------------------
if __name__ == "__main__":
    root = jax.random.PRNGKey(0)
    k_params, k_x = jax.random.split(root)
    params = init_params(k_params)
    x = jax.random.normal(k_x, (B, C, IMG, IMG), dtype=jnp.float32)  # NCHW, like torch

    feats = jax.block_until_ready(vit_forward(x, params))

    assert feats.shape == (B, D), feats.shape
    assert feats.dtype == jnp.float32
    assert bool(jnp.all(jnp.isfinite(feats)))
    print("KERNEL_OK")
</pallas_src>

<mosaic_0001>
module attributes {stable_mosaic.version = 11 : i64} {
  func.func @vit_kernel(%arg0: i32, %arg1: i32, %arg2: memref<1x5x768xf32, #tpu.memory_space<vmem>>, %arg3: memref<5x64xf32, #tpu.memory_space<vmem>>, %arg4: memref<768x64xf32, #tpu.memory_space<vmem>>, %arg5: memref<1x1x64xf32, #tpu.memory_space<vmem>>, %arg6: memref<1x1x64xf32, #tpu.memory_space<vmem>>, %arg7: memref<1x64x64xf32, #tpu.memory_space<vmem>>, %arg8: memref<1x1x64xf32, #tpu.memory_space<vmem>>, %arg9: memref<1x64x64xf32, #tpu.memory_space<vmem>>, %arg10: memref<1x1x64xf32, #tpu.memory_space<vmem>>, %arg11: memref<1x64x64xf32, #tpu.memory_space<vmem>>, %arg12: memref<1x1x64xf32, #tpu.memory_space<vmem>>, %arg13: memref<1x64x64xf32, #tpu.memory_space<vmem>>, %arg14: memref<1x1x64xf32, #tpu.memory_space<vmem>>, %arg15: memref<1x1x64xf32, #tpu.memory_space<vmem>>, %arg16: memref<1x1x64xf32, #tpu.memory_space<vmem>>, %arg17: memref<1x64x128xf32, #tpu.memory_space<vmem>>, %arg18: memref<1x1x128xf32, #tpu.memory_space<vmem>>, %arg19: memref<1x128x64xf32, #tpu.memory_space<vmem>>, %arg20: memref<1x1x64xf32, #tpu.memory_space<vmem>>, %arg21: memref<1x64xf32, #tpu.memory_space<vmem>>, %arg22: memref<1x64xf32, #tpu.memory_space<vmem>>, %arg23: memref<1x1x64xf32, #tpu.memory_space<vmem>>, %arg24: memref<5x64xf32, #tpu.memory_space<vmem>>) attributes {dimension_semantics = [#tpu.dimension_semantics<parallel>, #tpu.dimension_semantics<arbitrary>], iteration_bounds = array<i64: 2, 2>, scalar_prefetch = 0 : i64, scratch_operands = 1 : i64, tpu.core_type = #tpu.core_type<tc>, window_params = [{transform_indices = @transform_0, window_bounds = array<i64: 1, 5, 768>}, {pipeline_mode = #tpu.pipeline_mode<synchronous>, transform_indices = @transform_1, window_bounds = array<i64: 5, 64>}, {pipeline_mode = #tpu.pipeline_mode<synchronous>, transform_indices = @transform_2, window_bounds = array<i64: 768, 64>}, {transform_indices = @transform_3, window_bounds = array<i64: 1, 1, 64>}, {transform_indices = @transform_4, window_bounds = array<i64: 1, 1, 64>}, {transform_indices = @transform_5, window_bounds = array<i64: 1, 64, 64>}, {transform_indices = @transform_6, window_bounds = array<i64: 1, 1, 64>}, {transform_indices = @transform_7, window_bounds = array<i64: 1, 64, 64>}, {transform_indices = @transform_8, window_bounds = array<i64: 1, 1, 64>}, {transform_indices = @transform_9, window_bounds = array<i64: 1, 64, 64>}, {transform_indices = @transform_10, window_bounds = array<i64: 1, 1, 64>}, {transform_indices = @transform_11, window_bounds = array<i64: 1, 64, 64>}, {transform_indices = @transform_12, window_bounds = array<i64: 1, 1, 64>}, {transform_indices = @transform_13, window_bounds = array<i64: 1, 1, 64>}, {transform_indices = @transform_14, window_bounds = array<i64: 1, 1, 64>}, {transform_indices = @transform_15, window_bounds = array<i64: 1, 64, 128>}, {transform_indices = @transform_16, window_bounds = array<i64: 1, 1, 128>}, {transform_indices = @transform_17, window_bounds = array<i64: 1, 128, 64>}, {transform_indices = @transform_18, window_bounds = array<i64: 1, 1, 64>}, {pipeline_mode = #tpu.pipeline_mode<synchronous>, transform_indices = @transform_19, window_bounds = array<i64: 1, 64>}, {pipeline_mode = #tpu.pipeline_mode<synchronous>, transform_indices = @transform_20, window_bounds = array<i64: 1, 64>}, {transform_indices = @transform_21, window_bounds = array<i64: 1, 1, 64>}]} {
    %c0_i32 = arith.constant 0 : i32
    %0 = arith.cmpi eq, %arg1, %c0_i32 : i32
    %1 = arith.extui %0 : i1 to i32
    %c0_i32_0 = arith.constant 0 : i32
    %2 = arith.cmpi ne, %1, %c0_i32_0 : i32
    scf.if %2 {
      %c0_98 = arith.constant 0 : index
      %c0_99 = arith.constant 0 : index
      %c0_100 = arith.constant 0 : index
      %200 = vector.load %arg2[%c0_98, %c0_99, %c0_100] : memref<1x5x768xf32, #tpu.memory_space<vmem>>, vector<1x5x768xf32>
      %201 = vector.shape_cast %200 : vector<1x5x768xf32> to vector<5x768xf32>
      %c0_101 = arith.constant 0 : index
      %c0_102 = arith.constant 0 : index
      %202 = vector.load %arg4[%c0_101, %c0_102] : memref<768x64xf32, #tpu.memory_space<vmem>>, vector<768x64xf32>
      %cst_103 = arith.constant dense<0.000000e+00> : vector<5x64xf32>
      %203 = tpu.matmul %201, %202, %cst_103 {dimension_numbers = #tpu.dot_dimension_numbers<[1], [0], [0], [1], [0, 0, 1, 1], [], []>} : vector<5x768xf32>, vector<768x64xf32>, vector<5x64xf32> -> vector<5x64xf32>
      %c0_104 = arith.constant 0 : index
      %c0_105 = arith.constant 0 : index
      %204 = vector.load %arg3[%c0_104, %c0_105] : memref<5x64xf32, #tpu.memory_space<vmem>>, vector<5x64xf32>
      %205 = arith.addf %203, %204 : vector<5x64xf32>
      %c0_106 = arith.constant 0 : index
      %c0_107 = arith.constant 0 : index
      %206 = vector.load %arg24[%c0_106, %c0_107] : memref<5x64xf32, #tpu.memory_space<vmem>>, vector<5x64xf32>
      tpu.vector_store %arg24[%c0_106, %c0_107], %205 {strides = array<i32>} : memref<5x64xf32, #tpu.memory_space<vmem>>, vector<5x64xf32>,
    } else {
    }
    %c0 = arith.constant 0 : index
    %c0_1 = arith.constant 0 : index
    %3 = vector.load %arg24[%c0, %c0_1] : memref<5x64xf32, #tpu.memory_space<vmem>>, vector<5x64xf32>
    %c0_2 = arith.constant 0 : index
    %c0_3 = arith.constant 0 : index
    %c0_4 = arith.constant 0 : index
    %4 = vector.load %arg5[%c0_2, %c0_3, %c0_4] : memref<1x1x64xf32, #tpu.memory_space<vmem>>, vector<1x1x64xf32>
    %5 = vector.shape_cast %4 : vector<1x1x64xf32> to vector<1x64xf32>
    %c0_5 = arith.constant 0 : index
    %c0_6 = arith.constant 0 : index
    %c0_7 = arith.constant 0 : index
    %6 = vector.load %arg6[%c0_5, %c0_6, %c0_7] : memref<1x1x64xf32, #tpu.memory_space<vmem>>, vector<1x1x64xf32>
    %7 = vector.shape_cast %6 : vector<1x1x64xf32> to vector<1x64xf32>
    %cst = arith.constant dense<0.000000e+00> : vector<5xf32>
    %8 = vector.multi_reduction <add>, %3, %cst [1] : vector<5x64xf32> to vector<5xf32>
    %9 = vector.shape_cast %8 : vector<5xf32> to vector<5x1xf32>
    %cst_8 = arith.constant 6.400000e+01 : f32
    %10 = vector.broadcast %cst_8 : f32 to vector<5x1xf32>
    %11 = arith.divf %9, %10 : vector<5x1xf32>
    %12 = vector.broadcast %11 : vector<5x1xf32> to vector<5x64xf32>
    %13 = arith.subf %3, %12 : vector<5x64xf32>
    %14 = arith.mulf %13, %13 : vector<5x64xf32>
    %cst_9 = arith.constant dense<0.000000e+00> : vector<5xf32>
    %15 = vector.multi_reduction <add>, %14, %cst_9 [1] : vector<5x64xf32> to vector<5xf32>
    %16 = vector.shape_cast %15 : vector<5xf32> to vector<5x1xf32>
    %cst_10 = arith.constant 6.400000e+01 : f32
    %17 = vector.broadcast %cst_10 : f32 to vector<5x1xf32>
    %18 = arith.divf %16, %17 : vector<5x1xf32>
    %cst_11 = arith.constant 9.99999997E-7 : f32
    %19 = vector.broadcast %cst_11 : f32 to vector<5x1xf32>
    %20 = arith.addf %18, %19 : vector<5x1xf32>
    %21 = math.rsqrt %20 : vector<5x1xf32>
    %22 = vector.broadcast %21 : vector<5x1xf32> to vector<5x64xf32>
    %23 = arith.mulf %13, %22 : vector<5x64xf32>
    %24 = vector.broadcast %5 : vector<1x64xf32> to vector<5x64xf32>
    %25 = arith.mulf %23, %24 : vector<5x64xf32>
    %26 = vector.broadcast %7 : vector<1x64xf32> to vector<5x64xf32>
    %27 = arith.addf %25, %26 : vector<5x64xf32>
    %c0_12 = arith.constant 0 : index
    %c0_13 = arith.constant 0 : index
    %c0_14 = arith.constant 0 : index
    %28 = vector.load %arg7[%c0_12, %c0_13, %c0_14] : memref<1x64x64xf32, #tpu.memory_space<vmem>>, vector<1x64x64xf32>
    %29 = vector.shape_cast %28 : vector<1x64x64xf32> to vector<64x64xf32>
    %cst_15 = arith.constant dense<0.000000e+00> : vector<5x64xf32>
    %30 = tpu.matmul %27, %29, %cst_15 {dimension_numbers = #tpu.dot_dimension_numbers<[1], [0], [0], [1], [0, 0, 1, 1], [], []>} : vector<5x64xf32>, vector<64x64xf32>, vector<5x64xf32> -> vector<5x64xf32>
    %c0_16 = arith.constant 0 : index
    %c0_17 = arith.constant 0 : index
    %c0_18 = arith.constant 0 : index
    %31 = vector.load %arg8[%c0_16, %c0_17, %c0_18] : memref<1x1x64xf32, #tpu.memory_space<vmem>>, vector<1x1x64xf32>
    %32 = vector.shape_cast %31 : vector<1x1x64xf32> to vector<1x64xf32>
    %33 = vector.broadcast %32 : vector<1x64xf32> to vector<5x64xf32>
    %34 = arith.addf %30, %33 : vector<5x64xf32>
    %c0_19 = arith.constant 0 : index
    %c0_20 = arith.constant 0 : index
    %c0_21 = arith.constant 0 : index
    %35 = vector.load %arg9[%c0_19, %c0_20, %c0_21] : memref<1x64x64xf32, #tpu.memory_space<vmem>>, vector<1x64x64xf32>
    %36 = vector.shape_cast %35 : vector<1x64x64xf32> to vector<64x64xf32>
    %cst_22 = arith.constant dense<0.000000e+00> : vector<5x64xf32>
    %37 = tpu.matmul %27, %36, %cst_22 {dimension_numbers = #tpu.dot_dimension_numbers<[1], [0], [0], [1], [0, 0, 1, 1], [], []>} : vector<5x64xf32>, vector<64x64xf32>, vector<5x64xf32> -> vector<5x64xf32>
    %c0_23 = arith.constant 0 : index
    %c0_24 = arith.constant 0 : index
    %c0_25 = arith.constant 0 : index
    %38 = vector.load %arg10[%c0_23, %c0_24, %c0_25] : memref<1x1x64xf32, #tpu.memory_space<vmem>>, vector<1x1x64xf32>
    %39 = vector.shape_cast %38 : vector<1x1x64xf32> to vector<1x64xf32>
    %40 = vector.broadcast %39 : vector<1x64xf32> to vector<5x64xf32>
    %41 = arith.addf %37, %40 : vector<5x64xf32>
    %c0_26 = arith.constant 0 : index
    %c0_27 = arith.constant 0 : index
    %c0_28 = arith.constant 0 : index
    %42 = vector.load %arg11[%c0_26, %c0_27, %c0_28] : memref<1x64x64xf32, #tpu.memory_space<vmem>>, vector<1x64x64xf32>
    %43 = vector.shape_cast %42 : vector<1x64x64xf32> to vector<64x64xf32>
    %cst_29 = arith.constant dense<0.000000e+00> : vector<5x64xf32>
    %44 = tpu.matmul %27, %43, %cst_29 {dimension_numbers = #tpu.dot_dimension_numbers<[1], [0], [0], [1], [0, 0, 1, 1], [], []>} : vector<5x64xf32>, vector<64x64xf32>, vector<5x64xf32> -> vector<5x64xf32>
    %c0_30 = arith.constant 0 : index
    %c0_31 = arith.constant 0 : index
    %c0_32 = arith.constant 0 : index
    %45 = vector.load %arg12[%c0_30, %c0_31, %c0_32] : memref<1x1x64xf32, #tpu.memory_space<vmem>>, vector<1x1x64xf32>
    %46 = vector.shape_cast %45 : vector<1x1x64xf32> to vector<1x64xf32>
    %47 = vector.broadcast %46 : vector<1x64xf32> to vector<5x64xf32>
    %48 = arith.addf %44, %47 : vector<5x64xf32>
    %49 = vector.extract_strided_slice %34 {offsets = [0, 0], sizes = [5, 16], strides = [1, 1]} : vector<5x64xf32> to vector<5x16xf32>
    %50 = vector.extract_strided_slice %41 {offsets = [0, 0], sizes = [5, 16], strides = [1, 1]} : vector<5x64xf32> to vector<5x16xf32>
    %51 = vector.extract_strided_slice %48 {offsets = [0, 0], sizes = [5, 16], strides = [1, 1]} : vector<5x64xf32> to vector<5x16xf32>
    %cst_33 = arith.constant dense<0.000000e+00> : vector<5x5xf32>
    %52 = tpu.matmul %49, %50, %cst_33 {dimension_numbers = #tpu.dot_dimension_numbers<[1], [1], [0], [0], [0, 0, 1, 0], [], []>} : vector<5x16xf32>, vector<5x16xf32>, vector<5x5xf32> -> vector<5x5xf32>
    %cst_34 = arith.constant dense<0xFF800000> : vector<5xf32>
    %53 = vector.multi_reduction <maximumf>, %52, %cst_34 [1] : vector<5x5xf32> to vector<5xf32>
    %54 = vector.shape_cast %53 : vector<5xf32> to vector<5x1xf32>
    %55 = vector.broadcast %54 : vector<5x1xf32> to vector<5x5xf32>
    %56 = arith.subf %52, %55 : vector<5x5xf32>
    %57 = math.exp %56 : vector<5x5xf32>
    %cst_35 = arith.constant dense<0.000000e+00> : vector<5xf32>
    %58 = vector.multi_reduction <add>, %57, %cst_35 [1] : vector<5x5xf32> to vector<5xf32>
    %59 = vector.shape_cast %58 : vector<5xf32> to vector<5x1xf32>
    %60 = tpu.reciprocal %59 : vector<5x1xf32> -> vector<5x1xf32>
    %61 = vector.broadcast %60 : vector<5x1xf32> to vector<5x5xf32>
    %62 = arith.mulf %57, %61 : vector<5x5xf32>
    %cst_36 = arith.constant dense<0.000000e+00> : vector<5x16xf32>
    %63 = tpu.matmul %62, %51, %cst_36 {dimension_numbers = #tpu.dot_dimension_numbers<[1], [0], [0], [1], [0, 0, 1, 1], [], []>} : vector<5x5xf32>, vector<5x16xf32>, vector<5x16xf32> -> vector<5x16xf32>
    %64 = vector.extract_strided_slice %34 {offsets = [0, 16], sizes = [5, 16], strides = [1, 1]} : vector<5x64xf32> to vector<5x16xf32>
    %65 = vector.extract_strided_slice %41 {offsets = [0, 16], sizes = [5, 16], strides = [1, 1]} : vector<5x64xf32> to vector<5x16xf32>
    %66 = vector.extract_strided_slice %48 {offsets = [0, 16], sizes = [5, 16], strides = [1, 1]} : vector<5x64xf32> to vector<5x16xf32>
    %cst_37 = arith.constant dense<0.000000e+00> : vector<5x5xf32>
    %67 = tpu.matmul %64, %65, %cst_37 {dimension_numbers = #tpu.dot_dimension_numbers<[1], [1], [0], [0], [0, 0, 1, 0], [], []>} : vector<5x16xf32>, vector<5x16xf32>, vector<5x5xf32> -> vector<5x5xf32>
    %cst_38 = arith.constant dense<0xFF800000> : vector<5xf32>
    %68 = vector.multi_reduction <maximumf>, %67, %cst_38 [1] : vector<5x5xf32> to vector<5xf32>
    %69 = vector.shape_cast %68 : vector<5xf32> to vector<5x1xf32>
    %70 = vector.broadcast %69 : vector<5x1xf32> to vector<5x5xf32>
    %71 = arith.subf %67, %70 : vector<5x5xf32>
    %72 = math.exp %71 : vector<5x5xf32>
    %cst_39 = arith.constant dense<0.000000e+00> : vector<5xf32>
    %73 = vector.multi_reduction <add>, %72, %cst_39 [1] : vector<5x5xf32> to vector<5xf32>
    %74 = vector.shape_cast %73 : vector<5xf32> to vector<5x1xf32>
    %75 = tpu.reciprocal %74 : vector<5x1xf32> -> vector<5x1xf32>
    %76 = vector.broadcast %75 : vector<5x1xf32> to vector<5x5xf32>
    %77 = arith.mulf %72, %76 : vector<5x5xf32>
    %cst_40 = arith.constant dense<0.000000e+00> : vector<5x16xf32>
    %78 = tpu.matmul %77, %66, %cst_40 {dimension_numbers = #tpu.dot_dimension_numbers<[1], [0], [0], [1], [0, 0, 1, 1], [], []>} : vector<5x5xf32>, vector<5x16xf32>, vector<5x16xf32> -> vector<5x16xf32>
    %79 = vector.extract_strided_slice %34 {offsets = [0, 32], sizes = [5, 16], strides = [1, 1]} : vector<5x64xf32> to vector<5x16xf32>
    %80 = vector.extract_strided_slice %41 {offsets = [0, 32], sizes = [5, 16], strides = [1, 1]} : vector<5x64xf32> to vector<5x16xf32>
    %81 = vector.extract_strided_slice %48 {offsets = [0, 32], sizes = [5, 16], strides = [1, 1]} : vector<5x64xf32> to vector<5x16xf32>
    %cst_41 = arith.constant dense<0.000000e+00> : vector<5x5xf32>
    %82 = tpu.matmul %79, %80, %cst_41 {dimension_numbers = #tpu.dot_dimension_numbers<[1], [1], [0], [0], [0, 0, 1, 0], [], []>} : vector<5x16xf32>, vector<5x16xf32>, vector<5x5xf32> -> vector<5x5xf32>
    %cst_42 = arith.constant dense<0xFF800000> : vector<5xf32>
    %83 = vector.multi_reduction <maximumf>, %82, %cst_42 [1] : vector<5x5xf32> to vector<5xf32>
    %84 = vector.shape_cast %83 : vector<5xf32> to vector<5x1xf32>
    %85 = vector.broadcast %84 : vector<5x1xf32> to vector<5x5xf32>
    %86 = arith.subf %82, %85 : vector<5x5xf32>
    %87 = math.exp %86 : vector<5x5xf32>
    %cst_43 = arith.constant dense<0.000000e+00> : vector<5xf32>
    %88 = vector.multi_reduction <add>, %87, %cst_43 [1] : vector<5x5xf32> to vector<5xf32>
    %89 = vector.shape_cast %88 : vector<5xf32> to vector<5x1xf32>
    %90 = tpu.reciprocal %89 : vector<5x1xf32> -> vector<5x1xf32>
    %91 = vector.broadcast %90 : vector<5x1xf32> to vector<5x5xf32>
    %92 = arith.mulf %87, %91 : vector<5x5xf32>
    %cst_44 = arith.constant dense<0.000000e+00> : vector<5x16xf32>
    %93 = tpu.matmul %92, %81, %cst_44 {dimension_numbers = #tpu.dot_dimension_numbers<[1], [0], [0], [1], [0, 0, 1, 1], [], []>} : vector<5x5xf32>, vector<5x16xf32>, vector<5x16xf32> -> vector<5x16xf32>
    %94 = vector.extract_strided_slice %34 {offsets = [0, 48], sizes = [5, 16], strides = [1, 1]} : vector<5x64xf32> to vector<5x16xf32>
    %95 = vector.extract_strided_slice %41 {offsets = [0, 48], sizes = [5, 16], strides = [1, 1]} : vector<5x64xf32> to vector<5x16xf32>
    %96 = vector.extract_strided_slice %48 {offsets = [0, 48], sizes = [5, 16], strides = [1, 1]} : vector<5x64xf32> to vector<5x16xf32>
    %cst_45 = arith.constant dense<0.000000e+00> : vector<5x5xf32>
    %97 = tpu.matmul %94, %95, %cst_45 {dimension_numbers = #tpu.dot_dimension_numbers<[1], [1], [0], [0], [0, 0, 1, 0], [], []>} : vector<5x16xf32>, vector<5x16xf32>, vector<5x5xf32> -> vector<5x5xf32>
    %cst_46 = arith.constant dense<0xFF800000> : vector<5xf32>
    %98 = vector.multi_reduction <maximumf>, %97, %cst_46 [1] : vector<5x5xf32> to vector<5xf32>
    %99 = vector.shape_cast %98 : vector<5xf32> to vector<5x1xf32>
    %100 = vector.broadcast %99 : vector<5x1xf32> to vector<5x5xf32>
    %101 = arith.subf %97, %100 : vector<5x5xf32>
    %102 = math.exp %101 : vector<5x5xf32>
    %cst_47 = arith.constant dense<0.000000e+00> : vector<5xf32>
    %103 = vector.multi_reduction <add>, %102, %cst_47 [1] : vector<5x5xf32> to vector<5xf32>
    %104 = vector.shape_cast %103 : vector<5xf32> to vector<5x1xf32>
    %105 = tpu.reciprocal %104 : vector<5x1xf32> -> vector<5x1xf32>
    %106 = vector.broadcast %105 : vector<5x1xf32> to vector<5x5xf32>
    %107 = arith.mulf %102, %106 : vector<5x5xf32>
    %cst_48 = arith.constant dense<0.000000e+00> : vector<5x16xf32>
    %108 = tpu.matmul %107, %96, %cst_48 {dimension_numbers = #tpu.dot_dimension_numbers<[1], [0], [0], [1], [0, 0, 1, 1], [], []>} : vector<5x5xf32>, vector<5x16xf32>, vector<5x16xf32> -> vector<5x16xf32>
    %109 = tpu.concatenate %63, %78, %93, %108 in 1 : vector<5x16xf32>, vector<5x16xf32>, vector<5x16xf32>, vector<5x16xf32> -> vector<5x64xf32>
    %c0_49 = arith.constant 0 : index
    %c0_50 = arith.constant 0 : index
    %c0_51 = arith.constant 0 : index
    %110 = vector.load %arg13[%c0_49, %c0_50, %c0_51] : memref<1x64x64xf32, #tpu.memory_space<vmem>>, vector<1x64x64xf32>
    %111 = vector.shape_cast %110 : vector<1x64x64xf32> to vector<64x64xf32>
    %cst_52 = arith.constant dense<0.000000e+00> : vector<5x64xf32>
    %112 = tpu.matmul %109, %111, %cst_52 {dimension_numbers = #tpu.dot_dimension_numbers<[1], [0], [0], [1], [0, 0, 1, 1], [], []>} : vector<5x64xf32>, vector<64x64xf32>, vector<5x64xf32> -> vector<5x64xf32>
    %113 = arith.addf %3, %112 : vector<5x64xf32>
    %c0_53 = arith.constant 0 : index
    %c0_54 = arith.constant 0 : index
    %c0_55 = arith.constant 0 : index
    %114 = vector.load %arg14[%c0_53, %c0_54, %c0_55] : memref<1x1x64xf32, #tpu.memory_space<vmem>>, vector<1x1x64xf32>
    %115 = vector.shape_cast %114 : vector<1x1x64xf32> to vector<1x64xf32>
    %116 = vector.broadcast %115 : vector<1x64xf32> to vector<5x64xf32>
    %117 = arith.addf %113, %116 : vector<5x64xf32>
    %c0_56 = arith.constant 0 : index
    %c0_57 = arith.constant 0 : index
    %c0_58 = arith.constant 0 : index
    %118 = vector.load %arg15[%c0_56, %c0_57, %c0_58] : memref<1x1x64xf32, #tpu.memory_space<vmem>>, vector<1x1x64xf32>
    %119 = vector.shape_cast %118 : vector<1x1x64xf32> to vector<1x64xf32>
    %c0_59 = arith.constant 0 : index
    %c0_60 = arith.constant 0 : index
    %c0_61 = arith.constant 0 : index
    %120 = vector.load %arg16[%c0_59, %c0_60, %c0_61] : memref<1x1x64xf32, #tpu.memory_space<vmem>>, vector<1x1x64xf32>
    %121 = vector.shape_cast %120 : vector<1x1x64xf32> to vector<1x64xf32>
    %cst_62 = arith.constant dense<0.000000e+00> : vector<5xf32>
    %122 = vector.multi_reduction <add>, %117, %cst_62 [1] : vector<5x64xf32> to vector<5xf32>
    %123 = vector.shape_cast %122 : vector<5xf32> to vector<5x1xf32>
    %cst_63 = arith.constant 6.400000e+01 : f32
    %124 = vector.broadcast %cst_63 : f32 to vector<5x1xf32>
    %125 = arith.divf %123, %124 : vector<5x1xf32>
    %126 = vector.broadcast %125 : vector<5x1xf32> to vector<5x64xf32>
    %127 = arith.subf %117, %126 : vector<5x64xf32>
    %128 = arith.mulf %127, %127 : vector<5x64xf32>
    %cst_64 = arith.constant dense<0.000000e+00> : vector<5xf32>
    %129 = vector.multi_reduction <add>, %128, %cst_64 [1] : vector<5x64xf32> to vector<5xf32>
    %130 = vector.shape_cast %129 : vector<5xf32> to vector<5x1xf32>
    %cst_65 = arith.constant 6.400000e+01 : f32
    %131 = vector.broadcast %cst_65 : f32 to vector<5x1xf32>
    %132 = arith.divf %130, %131 : vector<5x1xf32>
    %cst_66 = arith.constant 9.99999997E-7 : f32
    %133 = vector.broadcast %cst_66 : f32 to vector<5x1xf32>
    %134 = arith.addf %132, %133 : vector<5x1xf32>
    %135 = math.rsqrt %134 : vector<5x1xf32>
    %136 = vector.broadcast %135 : vector<5x1xf32> to vector<5x64xf32>
    %137 = arith.mulf %127, %136 : vector<5x64xf32>
    %138 = vector.broadcast %119 : vector<1x64xf32> to vector<5x64xf32>
    %139 = arith.mulf %137, %138 : vector<5x64xf32>
    %140 = vector.broadcast %121 : vector<1x64xf32> to vector<5x64xf32>
    %141 = arith.addf %139, %140 : vector<5x64xf32>
    %c0_67 = arith.constant 0 : index
    %c0_68 = arith.constant 0 : index
    %c0_69 = arith.constant 0 : index
    %142 = vector.load %arg17[%c0_67, %c0_68, %c0_69] : memref<1x64x128xf32, #tpu.memory_space<vmem>>, vector<1x64x128xf32>
    %143 = vector.shape_cast %142 : vector<1x64x128xf32> to vector<64x128xf32>
    %cst_70 = arith.constant dense<0.000000e+00> : vector<5x128xf32>
    %144 = tpu.matmul %141, %143, %cst_70 {dimension_numbers = #tpu.dot_dimension_numbers<[1], [0], [0], [1], [0, 0, 1, 1], [], []>} : vector<5x64xf32>, vector<64x128xf32>, vector<5x128xf32> -> vector<5x128xf32>
    %c0_71 = arith.constant 0 : index
    %c0_72 = arith.constant 0 : index
    %c0_73 = arith.constant 0 : index
    %145 = vector.load %arg18[%c0_71, %c0_72, %c0_73] : memref<1x1x128xf32, #tpu.memory_space<vmem>>, vector<1x1x128xf32>
    %146 = vector.shape_cast %145 : vector<1x1x128xf32> to vector<1x128xf32>
    %147 = vector.broadcast %146 : vector<1x128xf32> to vector<5x128xf32>
    %148 = arith.addf %144, %147 : vector<5x128xf32>
    %cst_74 = arith.constant 5.000000e-01 : f32
    %149 = vector.broadcast %cst_74 : f32 to vector<5x128xf32>
    %150 = arith.mulf %149, %148 : vector<5x128xf32>
    %cst_75 = arith.constant 0.707106769 : f32
    %151 = vector.broadcast %cst_75 : f32 to vector<5x128xf32>
    %152 = arith.mulf %148, %151 : vector<5x128xf32>
    %153 = math.absf %152 : vector<5x128xf32>
    %cst_76 = arith.constant 0.327591091 : f32
    %154 = vector.broadcast %cst_76 : f32 to vector<5x128xf32>
    %155 = arith.mulf %154, %153 : vector<5x128xf32>
    %cst_77 = arith.constant 1.000000e+00 : f32
    %156 = vector.broadcast %cst_77 : f32 to vector<5x128xf32>
    %157 = arith.addf %156, %155 : vector<5x128xf32>
    %158 = tpu.reciprocal %157 : vector<5x128xf32> -> vector<5x128xf32>
    %cst_78 = arith.constant 1.06140542 : f32
    %159 = vector.broadcast %cst_78 : f32 to vector<5x128xf32>
    %160 = arith.mulf %159, %158 : vector<5x128xf32>
    %cst_79 = arith.constant -1.45315206 : f32
    %161 = vector.broadcast %cst_79 : f32 to vector<5x128xf32>
    %162 = arith.addf %160, %161 : vector<5x128xf32>
    %163 = arith.mulf %162, %158 : vector<5x128xf32>
    %cst_80 = arith.constant 1.42141378 : f32
    %164 = vector.broadcast %cst_80 : f32 to vector<5x128xf32>
    %165 = arith.addf %163, %164 : vector<5x128xf32>
    %166 = arith.mulf %165, %158 : vector<5x128xf32>
    %cst_81 = arith.constant -0.284496725 : f32
    %167 = vector.broadcast %cst_81 : f32 to vector<5x128xf32>
    %168 = arith.addf %166, %167 : vector<5x128xf32>
    %169 = arith.mulf %168, %158 : vector<5x128xf32>
    %cst_82 = arith.constant 0.254829586 : f32
    %170 = vector.broadcast %cst_82 : f32 to vector<5x128xf32>
    %171 = arith.addf %169, %170 : vector<5x128xf32>
    %172 = arith.mulf %171, %158 : vector<5x128xf32>
    %cst_83 = arith.constant 0.000000e+00 : f32
    %173 = vector.broadcast %cst_83 : f32 to vector<5x128xf32>
    %174 = arith.subf %173, %153 : vector<5x128xf32>
    %175 = arith.mulf %174, %153 : vector<5x128xf32>
    %176 = math.exp %175 : vector<5x128xf32>
    %177 = arith.mulf %172, %176 : vector<5x128xf32>
    %cst_84 = arith.constant 1.000000e+00 : f32
    %178 = vector.broadcast %cst_84 : f32 to vector<5x128xf32>
    %179 = arith.subf %178, %177 : vector<5x128xf32>
    %cst_85 = arith.constant 0.000000e+00 : f32
    %180 = vector.broadcast %cst_85 : f32 to vector<5x128xf32>
    %181 = arith.cmpf olt, %152, %180 : vector<5x128xf32>
    %cst_86 = arith.constant 0.000000e+00 : f32
    %182 = vector.broadcast %cst_86 : f32 to vector<5x128xf32>
    %183 = arith.subf %182, %179 : vector<5x128xf32>
    %184 = arith.select %181, %183, %179 : vector<5x128xi1>, vector<5x128xf32>
    %cst_87 = arith.constant 1.000000e+00 : f32
    %185 = vector.broadcast %cst_87 : f32 to vector<5x128xf32>
    %186 = arith.addf %185, %184 : vector<5x128xf32>
    %187 = arith.mulf %150, %186 : vector<5x128xf32>
    %c0_88 = arith.constant 0 : index
    %c0_89 = arith.constant 0 : index
    %c0_90 = arith.constant 0 : index
    %188 = vector.load %arg19[%c0_88, %c0_89, %c0_90] : memref<1x128x64xf32, #tpu.memory_space<vmem>>, vector<1x128x64xf32>
    %189 = vector.shape_cast %188 : vector<1x128x64xf32> to vector<128x64xf32>
    %cst_91 = arith.constant dense<0.000000e+00> : vector<5x64xf32>
    %190 = tpu.matmul %187, %189, %cst_91 {dimension_numbers = #tpu.dot_dimension_numbers<[1], [0], [0], [1], [0, 0, 1, 1], [], []>} : vector<5x128xf32>, vector<128x64xf32>, vector<5x64xf32> -> vector<5x64xf32>
    %191 = arith.addf %117, %190 : vector<5x64xf32>
    %c0_92 = arith.constant 0 : index
    %c0_93 = arith.constant 0 : index
    %c0_94 = arith.constant 0 : index
    %192 = vector.load %arg20[%c0_92, %c0_93, %c0_94] : memref<1x1x64xf32, #tpu.memory_space<vmem>>, vector<1x1x64xf32>
    %193 = vector.shape_cast %192 : vector<1x1x64xf32> to vector<1x64xf32>
    %194 = vector.broadcast %193 : vector<1x64xf32> to vector<5x64xf32>
    %195 = arith.addf %191, %194 : vector<5x64xf32>
    %c0_95 = arith.constant 0 : index
    %c0_96 = arith.constant 0 : index
    %196 = vector.load %arg24[%c0_95, %c0_96] : memref<5x64xf32, #tpu.memory_space<vmem>>, vector<5x64xf32>
    tpu.vector_store %arg24[%c0_95, %c0_96], %195 {strides = array<i32>} : memref<5x64xf32, #tpu.memory_space<vmem>>, vector<5x64xf32>,
    %c1_i32 = arith.constant 1 : i32
    %197 = arith.cmpi eq, %arg1, %c1_i32 : i32
    %198 = arith.extui %197 : i1 to i32
    %c0_i32_97 = arith.constant 0 : i32
    %199 = arith.cmpi ne, %198, %c0_i32_97 : i32
    scf.if %199 {
      %200 = vector.extract_strided_slice %195 {offsets = [0, 0], sizes = [1, 64], strides = [1, 1]} : vector<5x64xf32> to vector<1x64xf32>
      %c0_98 = arith.constant 0 : index
      %c0_99 = arith.constant 0 : index
      %201 = vector.load %arg21[%c0_98, %c0_99] : memref<1x64xf32, #tpu.memory_space<vmem>>, vector<1x64xf32>
      %c0_100 = arith.constant 0 : index
      %c0_101 = arith.constant 0 : index
      %202 = vector.load %arg22[%c0_100, %c0_101] : memref<1x64xf32, #tpu.memory_space<vmem>>, vector<1x64xf32>
      %cst_102 = arith.constant dense<0.000000e+00> : vector<1xf32>
      %203 = vector.multi_reduction <add>, %200, %cst_102 [1] : vector<1x64xf32> to vector<1xf32>
      %204 = vector.shape_cast %203 : vector<1xf32> to vector<1x1xf32>
      %cst_103 = arith.constant 6.400000e+01 : f32
      %205 = vector.broadcast %cst_103 : f32 to vector<1x1xf32>
      %206 = arith.divf %204, %205 : vector<1x1xf32>
      %207 = vector.broadcast %206 : vector<1x1xf32> to vector<1x64xf32>
      %208 = arith.subf %200, %207 : vector<1x64xf32>
      %209 = arith.mulf %208, %208 : vector<1x64xf32>
      %cst_104 = arith.constant dense<0.000000e+00> : vector<1xf32>
      %210 = vector.multi_reduction <add>, %209, %cst_104 [1] : vector<1x64xf32> to vector<1xf32>
      %211 = vector.shape_cast %210 : vector<1xf32> to vector<1x1xf32>
      %cst_105 = arith.constant 6.400000e+01 : f32
      %212 = vector.broadcast %cst_105 : f32 to vector<1x1xf32>
      %213 = arith.divf %211, %212 : vector<1x1xf32>
      %cst_106 = arith.constant 9.99999997E-7 : f32
      %214 = vector.broadcast %cst_106 : f32 to vector<1x1xf32>
      %215 = arith.addf %213, %214 : vector<1x1xf32>
      %216 = math.rsqrt %215 : vector<1x1xf32>
      %217 = vector.broadcast %216 : vector<1x1xf32> to vector<1x64xf32>
      %218 = arith.mulf %208, %217 : vector<1x64xf32>
      %219 = arith.mulf %218, %201 : vector<1x64xf32>
      %220 = arith.addf %219, %202 : vector<1x64xf32>
      %c0_107 = arith.constant 0 : index
      %c0_108 = arith.constant 0 : index
      %c0_109 = arith.constant 0 : index
      %221 = vector.load %arg23[%c0_107, %c0_108, %c0_109] : memref<1x1x64xf32, #tpu.memory_space<vmem>>, vector<1x1x64xf32>
      %222 = vector.shape_cast %221 : vector<1x1x64xf32> to vector<1x64xf32>
      %223 = vector.shape_cast %220 : vector<1x64xf32> to vector<1x1x64xf32>
      tpu.vector_store %arg23[%c0_107, %c0_108, %c0_109], %223 {strides = array<i32>} : memref<1x1x64xf32, #tpu.memory_space<vmem>>, vector<1x1x64xf32>,
    } else {
    }
    return
  }
  func.func @transform_0(%arg0: i32, %arg1: i32) -> (i32, i32, i32) {
    %c0_i32 = arith.constant 0 : i32
    %c0_i32_0 = arith.constant 0 : i32
    %c0_i32_1 = arith.constant 0 : i32
    return %arg0, %c0_i32, %c0_i32_0 : i32, i32, i32
  }
  func.func @transform_1(%arg0: i32, %arg1: i32) -> (i32, i32) {
    %c0_i32 = arith.constant 0 : i32
    %c0_i32_0 = arith.constant 0 : i32
    %c0_i32_1 = arith.constant 0 : i32
    return %c0_i32, %c0_i32_0 : i32, i32
  }
  func.func @transform_2(%arg0: i32, %arg1: i32) -> (i32, i32) {
    %c0_i32 = arith.constant 0 : i32
    %c0_i32_0 = arith.constant 0 : i32
    %c0_i32_1 = arith.constant 0 : i32
    return %c0_i32, %c0_i32_0 : i32, i32
  }
  func.func @transform_3(%arg0: i32, %arg1: i32) -> (i32, i32, i32) {
    %c0_i32 = arith.constant 0 : i32
    %c0_i32_0 = arith.constant 0 : i32
    %c0_i32_1 = arith.constant 0 : i32
    return %arg1, %c0_i32, %c0_i32_0 : i32, i32, i32
  }
  func.func @transform_4(%arg0: i32, %arg1: i32) -> (i32, i32, i32) {
    %c0_i32 = arith.constant 0 : i32
    %c0_i32_0 = arith.constant 0 : i32
    %c0_i32_1 = arith.constant 0 : i32
    return %arg1, %c0_i32, %c0_i32_0 : i32, i32, i32
  }
  func.func @transform_5(%arg0: i32, %arg1: i32) -> (i32, i32, i32) {
    %c0_i32 = arith.constant 0 : i32
    %c0_i32_0 = arith.constant 0 : i32
    %c0_i32_1 = arith.constant 0 : i32
    return %arg1, %c0_i32, %c0_i32_0 : i32, i32, i32
  }
  func.func @transform_6(%arg0: i32, %arg1: i32) -> (i32, i32, i32) {
    %c0_i32 = arith.constant 0 : i32
    %c0_i32_0 = arith.constant 0 : i32
    %c0_i32_1 = arith.constant 0 : i32
    return %arg1, %c0_i32, %c0_i32_0 : i32, i32, i32
  }
  func.func @transform_7(%arg0: i32, %arg1: i32) -> (i32, i32, i32) {
    %c0_i32 = arith.constant 0 : i32
    %c0_i32_0 = arith.constant 0 : i32
    %c0_i32_1 = arith.constant 0 : i32
    return %arg1, %c0_i32, %c0_i32_0 : i32, i32, i32
  }
  func.func @transform_8(%arg0: i32, %arg1: i32) -> (i32, i32, i32) {
    %c0_i32 = arith.constant 0 : i32
    %c0_i32_0 = arith.constant 0 : i32
    %c0_i32_1 = arith.constant 0 : i32
    return %arg1, %c0_i32, %c0_i32_0 : i32, i32, i32
  }
  func.func @transform_9(%arg0: i32, %arg1: i32) -> (i32, i32, i32) {
    %c0_i32 = arith.constant 0 : i32
    %c0_i32_0 = arith.constant 0 : i32
    %c0_i32_1 = arith.constant 0 : i32
    return %arg1, %c0_i32, %c0_i32_0 : i32, i32, i32
  }
  func.func @transform_10(%arg0: i32, %arg1: i32) -> (i32, i32, i32) {
    %c0_i32 = arith.constant 0 : i32
    %c0_i32_0 = arith.constant 0 : i32
    %c0_i32_1 = arith.constant 0 : i32
    return %arg1, %c0_i32, %c0_i32_0 : i32, i32, i32
  }
  func.func @transform_11(%arg0: i32, %arg1: i32) -> (i32, i32, i32) {
    %c0_i32 = arith.constant 0 : i32
    %c0_i32_0 = arith.constant 0 : i32
    %c0_i32_1 = arith.constant 0 : i32
    return %arg1, %c0_i32, %c0_i32_0 : i32, i32, i32
  }
  func.func @transform_12(%arg0: i32, %arg1: i32) -> (i32, i32, i32) {
    %c0_i32 = arith.constant 0 : i32
    %c0_i32_0 = arith.constant 0 : i32
    %c0_i32_1 = arith.constant 0 : i32
    return %arg1, %c0_i32, %c0_i32_0 : i32, i32, i32
  }
  func.func @transform_13(%arg0: i32, %arg1: i32) -> (i32, i32, i32) {
    %c0_i32 = arith.constant 0 : i32
    %c0_i32_0 = arith.constant 0 : i32
    %c0_i32_1 = arith.constant 0 : i32
    return %arg1, %c0_i32, %c0_i32_0 : i32, i32, i32
  }
  func.func @transform_14(%arg0: i32, %arg1: i32) -> (i32, i32, i32) {
    %c0_i32 = arith.constant 0 : i32
    %c0_i32_0 = arith.constant 0 : i32
    %c0_i32_1 = arith.constant 0 : i32
    return %arg1, %c0_i32, %c0_i32_0 : i32, i32, i32
  }
  func.func @transform_15(%arg0: i32, %arg1: i32) -> (i32, i32, i32) {
    %c0_i32 = arith.constant 0 : i32
    %c0_i32_0 = arith.constant 0 : i32
    %c0_i32_1 = arith.constant 0 : i32
    return %arg1, %c0_i32, %c0_i32_0 : i32, i32, i32
  }
  func.func @transform_16(%arg0: i32, %arg1: i32) -> (i32, i32, i32) {
    %c0_i32 = arith.constant 0 : i32
    %c0_i32_0 = arith.constant 0 : i32
    %c0_i32_1 = arith.constant 0 : i32
    return %arg1, %c0_i32, %c0_i32_0 : i32, i32, i32
  }
  func.func @transform_17(%arg0: i32, %arg1: i32) -> (i32, i32, i32) {
    %c0_i32 = arith.constant 0 : i32
    %c0_i32_0 = arith.constant 0 : i32
    %c0_i32_1 = arith.constant 0 : i32
    return %arg1, %c0_i32, %c0_i32_0 : i32, i32, i32
  }
  func.func @transform_18(%arg0: i32, %arg1: i32) -> (i32, i32, i32) {
    %c0_i32 = arith.constant 0 : i32
    %c0_i32_0 = arith.constant 0 : i32
    %c0_i32_1 = arith.constant 0 : i32
    return %arg1, %c0_i32, %c0_i32_0 : i32, i32, i32
  }
  func.func @transform_19(%arg0: i32, %arg1: i32) -> (i32, i32) {
    %c0_i32 = arith.constant 0 : i32
    %c0_i32_0 = arith.constant 0 : i32
    %c0_i32_1 = arith.constant 0 : i32
    return %c0_i32, %c0_i32_0 : i32, i32
  }
  func.func @transform_20(%arg0: i32, %arg1: i32) -> (i32, i32) {
    %c0_i32 = arith.constant 0 : i32
    %c0_i32_0 = arith.constant 0 : i32
    %c0_i32_1 = arith.constant 0 : i32
    return %c0_i32, %c0_i32_0 : i32, i32
  }
  func.func @transform_21(%arg0: i32, %arg1: i32) -> (i32, i32, i32) {
    %c0_i32 = arith.constant 0 : i32
    %c0_i32_0 = arith.constant 0 : i32
    %c0_i32_1 = arith.constant 0 : i32
    return %arg0, %c0_i32, %c0_i32_0 : i32, i32, i32
  }
}

</mosaic_0001>

<bundles_post_ra>
// kernel: vit_forward.1
= control target key start
LH: loop header
LB: loop body
LE: loop exit
PB: predicated region body
PF: predicated region fallthrough
CT: control target
= control target key end

     0   :  { %s3170_s0 = inlined_call_operand.vmem [shape: f32[2,5,768], index: 0, kind: input, shape index: {}]   ;;  %s3171_s1 = inlined_call_operand.vmem [shape: f32[5,64], index: 1, kind: input, shape index: {}]   ;;  %s3172_s2 = inlined_call_operand.vmem [shape: f32[768,64], index: 2, kind: input, shape index: {}]   ;;  %s3173_s3 = inlined_call_operand.vmem [shape: f32[2,1,64], index: 3, kind: input, shape index: {}]   ;;  %s3174_s4 = inlined_call_operand.vmem [shape: f32[2,1,64], index: 4, kind: input, shape index: {}]   ;;  %s3175_s5 = inlined_call_operand.vmem [shape: f32[2,64,64], index: 5, kind: input, shape index: {}]   ;;  %s3176_s6 = inlined_call_operand.vmem [shape: f32[2,1,64], index: 6, kind: input, shape index: {}]   ;;  %s3177_s7 = inlined_call_operand.vmem [shape: f32[2,64,64], index: 7, kind: input, shape index: {}]   ;;  %s3178_s8 = inlined_call_operand.vmem [shape: f32[2,1,64], index: 8, kind: input, shape index: {}]   ;;  %s3179_s9 = inlined_call_operand.vmem [shape: f32[2,64,64], index: 9, kind: input, shape index: {}]   ;;  %s3180_s10 = inlined_call_operand.vmem [shape: f32[2,1,64], index: 10, kind: input, shape index: {}]   ;;  %s3181_s11 = inlined_call_operand.vmem [shape: f32[2,64,64], index: 11, kind: input, shape index: {}]   ;;  %s3182_s12 = inlined_call_operand.vmem [shape: f32[2,1,64], index: 12, kind: input, shape index: {}]   ;;  %s3183_s13 = inlined_call_operand.vmem [shape: f32[2,1,64], index: 13, kind: input, shape index: {}]   ;;  %s3184_s14 = inlined_call_operand.vmem [shape: f32[2,1,64], index: 14, kind: input, shape index: {}]   ;;  %s3185_s15 = inlined_call_operand.vmem [shape: f32[2,64,128], index: 15, kind: input, shape index: {}]   ;;  %s3186_s16 = inlined_call_operand.vmem [shape: f32[2,1,128], index: 16, kind: input, shape index: {}]   ;;  %s3187_s17 = inlined_call_operand.vmem [shape: f32[2,128,64], index: 17, kind: input, shape index: {}]   ;;  %s3188_s18 = inlined_call_operand.vmem [shape: f32[2,1,64], index: 18, kind: input, shape index: {}]   ;;  %s3189_s19 = inlined_call_operand.vmem [shape: f32[1,64], index: 19, kind: input, shape index: {}]   ;;  %s3190_s20 = inlined_call_operand.vmem [shape: f32[1,64], index: 20, kind: input, shape index: {}]   ;;  %s3191_s21 = inlined_call_operand.hbm [shape: f32[2,1,64], index: 21, kind: output, shape index: {}]  }
   0x1   :  { %3206 = sst [smem:[#allocation18_spill]] %s3170_s0 }
   0x2   :  { %3207 = sst [smem:[#allocation19_spill]] %s3171_s1 }
   0x3   :  { %3208 = sst [smem:[#allocation20_spill]] %s3172_s2 }
   0x4   :  { %3209 = sst [smem:[#allocation21_spill]] %s3173_s3 }
   0x5   :  { %3210 = sst [smem:[#allocation22_spill]] %s3174_s4 }
   0x6   :  { %3211 = sst [smem:[#allocation23_spill]] %s3175_s5 }
   0x7   :  { %3212 = sst [smem:[#allocation24_spill]] %s3177_s7 }
   0x8   :  { %3213 = sst [smem:[#allocation25_spill]] %s3178_s8 }
   0x9   :  { %3214 = sst [smem:[#allocation26_spill]] %s3179_s9 }
   0xa   :  { %3215 = sst [smem:[#allocation27_spill]] %s3181_s11 }
   0xb   :  { %3216 = sst [smem:[#allocation28_spill]] %s3182_s12 }
   0xc   :  { %3217 = sst [smem:[#allocation29_spill]] %s3183_s13 }
   0xd   :  { %3218 = sst [smem:[#allocation30_spill]] %s3187_s17 }
   0xe   :  { %3219 = sst [smem:[#allocation31_spill]] %s3188_s18 }
   0xf   :  { %3220 = sst [smem:[#allocation32_spill]] %s3189_s19 }
  0x10   :  { %3221 = sst [smem:[#allocation33_spill]] %s3190_s20 }
  0x11   :  { %3222 = sst [smem:[#allocation34_spill]] %s3191_s21 }
  0x12   :  { %26 = vsyncpa [#allocation4], 0 }
  0x13   :  { %28 = vsyncpa [#allocation4 + $0x1], 0  ;;  %s2468_s2 = smov 0   ;;  %s2470_s25 = smov 0  }
  0x14   :  { %s2472_s26 = smov 0   ;;  %s2474_s27 = smov 0  }
  0x15   :  { %s2476_s3 = smov 0   ;;  %s2478_s28 = smov 0  }
  0x16   :  { %s2480_s29 = smov 0   ;;  %s2482_s0 = smov 0  }
  0x17 LB: > { %3223 = sst [smem:[#allocation6_spill]] %s2321_s2  ;;  %s2089_s4 = sadd.s32 4294967295, %s2349_s0   ;;  %s2349_s0 = sphi %s2482_s0, %s34_s0   ;;  %s2345_s29 = sphi %s2480_s29, %s3282_s29   ;;  %s2341_s28 = sphi %s2478_s28, %s3281_s28   ;;  %s2337_s3 = sphi %s2476_s3, %s3280_s3   ;;  %s2333_s27 = sphi %s2474_s27, %s3279_s27   ;;  %s2329_s26 = sphi %s2472_s26, %s3278_s26   ;;  %s2325_s25 = sphi %s2470_s25, %s3284_s25   ;;  %s2321_s2 = sphi %s2468_s2, %s3283_s2  }
  0x18   : > { %3224 = sst [smem:[#allocation7_spill]] %s2329_s26  ;;  %s2090_s30 = sadd.s32 4294967294, %s2349_s0  }
  0x19   : > { %3225 = sst [smem:[#allocation8_spill]] %s2333_s27  ;;  %s43_s5 = sadd.s32 1, %s2341_s28 }
  0x1a   : > { %3226 = sst [smem:[#allocation9_spill]] %s2337_s3  ;;  %p44_p0 = scmp.ge.s32.totalorder %s43_s5, 2 }
  0x1b   : > { %3227 = sst [smem:[#allocation10_spill]] %s2341_s28  ;;  %s46_s22 = sadd.s32 1, %s2345_s29 }
  0x1c   : > { %3228 = sst [smem:[#allocation11_spill]] %s2345_s29  ;;  %p589_p1 = scmp.ne.s32.totalorder %s2329_s26, %s2325_s25 }
  0x1d   : > { %3229 = sst [smem:[#allocation12_spill]] %s2349_s0  ;;  %p590_p2 = scmp.eq.s32.totalorder %s2089_s4, 3 }
  0x1e   : > { %s3286_s5 = smov (%p44_p0, %s43_s5), 0  ;;  %s3288_s22 = smov (!%p44_p0, %s46_s22), %s2345_s29 }
  0x1f   : > { %3230 = sst [smem:[#allocation13_spill]] %s3286_s5  ;;  %p2517_p3 = por %p590_p2, %p589_p1 }
  0x20   : > { %p595_p4 = scmp.ne.s32.totalorder %s2325_s25, %s2321_s2  ;;  %p48_p5 = scmp.ge.s32.totalorder %s3288_s22, 2 }
  0x21   : > { %s3231_s23 = scalar_select %p2517_p3, 1, 0 }
  0x22   : > { %p596_p6 = scmp.eq.s32.totalorder %s2090_s30, 3  ;;  %p2093_p7 = scmp.ge.s32.totalorder %s2349_s0, 1 }
  0x23   : > { %3232 = sst [smem:[#allocation14_spill]] %s3231_s23  ;;  %p742_p8 = scmp.lt.s32.totalorder %s2349_s0, 5 }
  0x24   : > { %s3290_s22 = smov (%p48_p5, %s3288_s22), 0  ;;  %p2527_p9 = por %p596_p6, %p595_p4 }
  0x25   : > { %3233 = sst [smem:[#allocation15_spill]] %s3290_s22  ;;  %p743_p10 = pnand %p2093_p7, %p742_p8 }
  0x26   : > { %s3234_s1 = scalar_select %p2527_p9, 1, 0 }
  0x27   : > { %s576_s24 = ssub.s32 %s2345_s29, %s3290_s22  ;;  %s579_s4 = sadd.s32 1, %s2329_s26 }
  0x28   : > { %3235 = sst [smem:[#allocation16_spill]] %s3234_s1  ;;  %p577_p11 = scmp.eq.s32.totalorder %s576_s24, 0 }
  0x29   : > { %746 = sbr.rel (%p743_p10) target bundleno = 2453 (0x995), region = 104  ;;  %p861_p12 = scmp.lt.s32.totalorder (!%p743_p10), %s2337_s3, 1 }
  0x2a   : > { %s2535_s5 = scalar_select %p577_p11, %s2329_s26, %s579_s4  }
  0x2b   : > { %p866_p13 = scmp.lt.s32.totalorder (!%p743_p10), %s2333_s27, 1  ;;  %s3241_s7 = sld [smem:[#allocation24_spill]] (!%p743_p10) }
  0x2c   : > { %3236 = sst [smem:[#allocation17_spill]] %s2535_s5  ;;  %s3249_s0 = sand.u32 (!%p743_p10), 1, %s2325_s25  }
  0x2d   : > { %s3243_s9 = sld [smem:[#allocation26_spill]] (!%p743_p10) }
  0x2e   : > { %s862_s28 = scalar_select %p861_p12, %s2337_s3, 1 }
  0x2f   : > { %s2542_s2 = scalar_select %p866_p13, %s2333_s27, 1 }
  0x30   : > { %s2138_s24 = smul.u32 48, %s862_s28  ;;  %s3239_s3 = sld [smem:[#allocation18_spill]] }
  0x31   : > { %s2132_s19 = sshll.u32 %s2542_s2, 6  ;;  %s3240_s28 = sld [smem:[#allocation23_spill]] }
  0x32   : > { %s2570_s1 = scalar_lea.vmem %s3241_s7, %s2132_s19  ;;  %s3244_s11 = sld [smem:[#allocation27_spill]] }
  0x33   : > { %s2579_s17 = scalar_lea.vmem %s3243_s9, %s2132_s19  ;;  %s909_s9 = scalar_lea.vmem %s3184_s14, %s2542_s2 }
  0x34   : > { %s3247_s7 = sld [smem:[#allocation31_spill]] }
  0x35   : > { %s3250_s8 = sld [smem:[#allocation8_spill]] }
  0x36   : > { %s2555_s20 = scalar_lea.vmem %s3239_s3, %s2138_s24  ;;  %s3248_s3 = sld [smem:[#allocation30_spill]] }
  0x37   : > { %s2561_s18 = scalar_lea.vmem %s3240_s28, %s2132_s19  ;;  %s2605_s28 = scalar_lea.vmem %s3185_s15, %s2132_s19 }
  0x38   : > { %s2588_s4 = scalar_lea.vmem %s3244_s11, %s2132_s19  ;;  %s2137_s11 = sshll.u32 %s2542_s2, 7 }
  0x39   : > { %s2623_s24 = scalar_lea.vmem [#allocation3], %s3249_s0 }
  0x3a   : > { %s925_s12 = scalar_lea.vmem %s3247_s7, %s2542_s2 }
  0x3b   : > { %p2107_p0 = scmp.ne.s32.totalorder %s3250_s8, 0 }
  0x3c   : > { %s2619_s13 = scalar_lea.vmem %s3248_s3, %s2137_s11  ;;  %s3251_s22 = sld [smem:[#allocation20_spill]] (!%p2107_p0) }
  0x3d   : > { %929 = sbr.rel (%p2107_p0) target bundleno = 261 (0x105), region = 108  ;;  %s3252_s30 = sld [smem:[#allocation19_spill]] (!%p2107_p0) }
  0x42   : > { %v951_v0 = vld [vmem:[%s3251_s22 + $0x78] sm:$0xff]  ;;  %v950_v1 = vld [vmem:[%s3251_s22 + $0x70] sm:$0xff]  ;;  %v949_v4 = vld [vmem:[%s3251_s22 + $0x68] sm:$0xff]  ;;  %vm1153_vm0 = vcmask 520192  }
  0x43   : > { %v967_v2 = vld [vmem:[%s3251_s22 + $0xf8] sm:$0xff]  ;;  %1033 = vmatpush.msra.mxu0 %v951_v0  ;;  %v966_v3 = vld [vmem:[%s3251_s22 + $0xf0] sm:$0xff]  ;;  %v965_v5 = vld [vmem:[%s3251_s22 + $0xe8] sm:$0xff] }
  0x44   : > { %1053 = vmatpush.msra.mxu1 %v967_v2  ;;  %v948_v6 = vld [vmem:[%s3251_s22 + $0x60] sm:$0xff]  ;;  %v947_v8 = vld [vmem:[%s3251_s22 + $0x58] sm:$0xff]  ;;  %v946_v10 = vld [vmem:[%s3251_s22 + $0x50] sm:$0xff] }
  0x45   : > { %1034 = vmatpush.msra.mxu0 %v950_v1  ;;  %v964_v7 = vld [vmem:[%s3251_s22 + $0xe0] sm:$0xff]  ;;  %v963_v9 = vld [vmem:[%s3251_s22 + $0xd8] sm:$0xff]  ;;  %v962_v12 = vld [vmem:[%s3251_s22 + $0xd0] sm:$0xff] }
  0x46   : > { %1054 = vmatpush.msra.mxu1 %v966_v3  ;;  %v983_v11 = vld [vmem:[%s3251_s22 + $0x178] sm:$0xff]  ;;  %v982_v13 = vld [vmem:[%s3251_s22 + $0x170] sm:$0xff]  ;;  %v981_v15 = vld [vmem:[%s3251_s22 + $0x168] sm:$0xff] }
  0x47   : > { %1035 = vmatpush.msra.mxu0 %v949_v4  ;;  %1073 = vmatpush.msra.mxu2 %v983_v11  ;;  %v999_v14 = vld [vmem:[%s3251_s22 + $0x1f8] sm:$0xff]  ;;  %v998_v16 = vld [vmem:[%s3251_s22 + $0x1f0] sm:$0xff]  ;;  %v945_v17 = vld [vmem:[%s3251_s22 + $0x48] sm:$0xff] }
  0x48   : > { %1055 = vmatpush.msra.mxu1 %v965_v5  ;;  %v961_v18 = vld [vmem:[%s3251_s22 + $0xc8] sm:$0xff]  ;;  %1093 = vmatpush.msra.mxu3 %v999_v14  ;;  %v980_v19 = vld [vmem:[%s3251_s22 + $0x160] sm:$0xff]  ;;  %v979_v23 = vld [vmem:[%s3251_s22 + $0x158] sm:$0xff] }
  0x49   : > { %1036 = vmatpush.msra.mxu0 %v948_v6  ;;  %1074 = vmatpush.msra.mxu2 %v982_v13  ;;  %v997_v20 = vld [vmem:[%s3251_s22 + $0x1e8] sm:$0xff]  ;;  %v944_v21 = vld [vmem:[%s3251_s22 + $0x40] sm:$0xff]  ;;  %v943_v25 = vld [vmem:[%s3251_s22 + $0x38] sm:$0xff] }
  0x4a   : > { %1056 = vmatpush.msra.mxu1 %v964_v7  ;;  %v960_v22 = vld [vmem:[%s3251_s22 + $0xc0] sm:$0xff]  ;;  %1094 = vmatpush.msra.mxu3 %v998_v16  ;;  %v959_v26 = vld [vmem:[%s3251_s22 + $0xb8] sm:$0xff]  ;;  %v978_v27 = vld [vmem:[%s3251_s22 + $0x150] sm:$0xff] }
  0x4b   : > { %1037 = vmatpush.msra.mxu0 %v947_v8  ;;  %1075 = vmatpush.msra.mxu2 %v981_v15  ;;  %v996_v24 = vld [vmem:[%s3251_s22 + $0x1e0] sm:$0xff]  ;;  %v995_v28 = vld [vmem:[%s3251_s22 + $0x1d8] sm:$0xff]  ;;  %v942_v29 = vld [vmem:[%s3251_s22 + $0x30] sm:$0xff] }
  0x4c   : > { %1057 = vmatpush.msra.mxu1 %v963_v9  ;;  %1095 = vmatpush.msra.mxu3 %v997_v20  ;;  %v958_v30 = vld [vmem:[%s3251_s22 + $0xb0] sm:$0xff]  ;;  %v977_v31 = vld [vmem:[%s3251_s22 + $0x148] sm:$0xff]  ;;  %v976_v35 = vld [vmem:[%s3251_s22 + $0x140] sm:$0xff] }
  0x4d   : > { %1038 = vmatpush.msra.mxu0 %v946_v10  ;;  %1076 = vmatpush.msra.mxu2 %v980_v19  ;;  %v994_v32 = vld [vmem:[%s3251_s22 + $0x1d0] sm:$0xff]  ;;  %v941_v33 = vld [vmem:[%s3251_s22 + $0x28] sm:$0xff]  ;;  %v940_v37 = vld [vmem:[%s3251_s22 + $0x20] sm:$0xff] }
  0x4e   : > { %1058 = vmatpush.msra.mxu1 %v962_v12  ;;  %1096 = vmatpush.msra.mxu3 %v996_v24  ;;  %v957_v34 = vld [vmem:[%s3251_s22 + $0xa8] sm:$0xff]  ;;  %v956_v38 = vld [vmem:[%s3251_s22 + $0xa0] sm:$0xff]  ;;  %v975_v39 = vld [vmem:[%s3251_s22 + $0x138] sm:$0xff] }
  0x4f   : > { %1039 = vmatpush.msra.mxu0 %v945_v17  ;;  %1077 = vmatpush.msra.mxu2 %v979_v23  ;;  %v993_v36 = vld [vmem:[%s3251_s22 + $0x1c8] sm:$0xff]  ;;  %v992_v40 = vld [vmem:[%s3251_s22 + $0x1c0] sm:$0xff]  ;;  %v939_v41 = vld [vmem:[%s3251_s22 + $0x18] sm:$0xff] }
  0x50   : > { %1059 = vmatpush.msra.mxu1 %v961_v18  ;;  %1097 = vmatpush.msra.mxu3 %v995_v28  ;;  %v955_v42 = vld [vmem:[%s3251_s22 + $0x98] sm:$0xff]  ;;  %v974_v43 = vld [vmem:[%s3251_s22 + $0x130] sm:$0xff]  ;;  %v973_v47 = vld [vmem:[%s3251_s22 + $0x128] sm:$0xff] }
  0x51   : > { %1040 = vmatpush.msra.mxu0 %v944_v21  ;;  %1078 = vmatpush.msra.mxu2 %v978_v27  ;;  %v991_v44 = vld [vmem:[%s3251_s22 + $0x1b8] sm:$0xff]  ;;  %v938_v45 = vld [vmem:[%s3251_s22 + $0x10] sm:$0xff]  ;;  %v937_v49 = vld [vmem:[%s3251_s22 + $0x8] sm:$0xff] }
  0x52   : > { %1060 = vmatpush.msra.mxu1 %v960_v22  ;;  %1098 = vmatpush.msra.mxu3 %v994_v32  ;;  %v954_v46 = vld [vmem:[%s3251_s22 + $0x90] sm:$0xff]  ;;  %v953_v50 = vld [vmem:[%s3251_s22 + $0x88] sm:$0xff]  ;;  %v972_v51 = vld [vmem:[%s3251_s22 + $0x120] sm:$0xff] }
  0x53   : > { %1041 = vmatpush.msra.mxu0 %v943_v25  ;;  %1079 = vmatpush.msra.mxu2 %v977_v31  ;;  %v990_v48 = vld [vmem:[%s3251_s22 + $0x1b0] sm:$0xff]  ;;  %v989_v52 = vld [vmem:[%s3251_s22 + $0x1a8] sm:$0xff]  ;;  %v936_v53 = vld [vmem:[%s3251_s22] sm:$0xff] }
  0x54   : > { %1061 = vmatpush.msra.mxu1 %v959_v26  ;;  %1099 = vmatpush.msra.mxu3 %v993_v36  ;;  %v952_v54 = vld [vmem:[%s3251_s22 + $0x80] sm:$0xff]  ;;  %v1015_v55 = vld [vmem:[%s3251_s22 + $0x278] sm:$0xff]  ;;  %v1014_v59 = vld [vmem:[%s3251_s22 + $0x270] sm:$0xff] }
  0x55   : > { %1042 = vmatpush.msra.mxu0 %v942_v29  ;;  %1080 = vmatpush.msra.mxu2 %v976_v35  ;;  %v1031_v56 = vld [vmem:[%s3251_s22 + $0x2f8] sm:$0xff]  ;;  %v988_v58 = vld [vmem:[%s3251_s22 + $0x1a0] sm:$0xff]  ;;  %v1030_v60 = vld [vmem:[%s3251_s22 + $0x2f0] sm:$0xff] }
  0x56   : > { %1062 = vmatpush.msra.mxu1 %v958_v30  ;;  %1100 = vmatpush.msra.mxu3 %v992_v40  ;;  %v971_v57 = vld [vmem:[%s3251_s22 + $0x118] sm:$0xff]  ;;  %v970_v61 = vld [vmem:[%s3251_s22 + $0x110] sm:$0xff]  ;;  %v1013_v63 = vld [vmem:[%s3251_s22 + $0x268] sm:$0xff] }
  0x57   : > { %1043 = vmatpush.msra.mxu0 %v941_v33  ;;  %1081 = vmatpush.msra.mxu2 %v975_v39  ;;  %v987_v62 = vld [vmem:[%s3251_s22 + $0x198] sm:$0xff]  ;;  %v1029_v0 = vld [vmem:[%s3251_s22 + $0x2e8] sm:$0xff]  ;;  %v986_v2 = vld [vmem:[%s3251_s22 + $0x190] sm:$0xff] }
  0x58   : > { %1063 = vmatpush.msra.mxu1 %v957_v34  ;;  %1101 = vmatpush.msra.mxu3 %v991_v44  ;;  %v969_v1 = vld [vmem:[%s3251_s22 + $0x108] sm:$0xff]  ;;  %v1012_v3 = vld [vmem:[%s3251_s22 + $0x260] sm:$0xff]  ;;  %v1011_v7 = vld [vmem:[%s3251_s22 + $0x258] sm:$0xff] }
  0x59   : > { %1044 = vmatpush.msra.mxu0 %v940_v37  ;;  %1082 = vmatpush.msra.mxu2 %v974_v43  ;;  %v1028_v4 = vld [vmem:[%s3251_s22 + $0x2e0] sm:$0xff]  ;;  %v985_v6 = vld [vmem:[%s3251_s22 + $0x188] sm:$0xff]  ;;  %v1027_v8 = vld [vmem:[%s3251_s22 + $0x2d8] sm:$0xff] }
  0x5a   : > { %1064 = vmatpush.msra.mxu1 %v956_v38  ;;  %1102 = vmatpush.msra.mxu3 %v990_v48  ;;  %v968_v5 = vld [vmem:[%s3251_s22 + $0x100] sm:$0xff]  ;;  %v932_v9 = vld [vmem:[%s2555_s20 + $0x10] sm:$0x1f]  ;;  %v933_v14 = vld [vmem:[%s2555_s20 + $0x18] sm:$0x1f] }
  0x5b   : > { %1045 = vmatpush.msra.mxu0 %v939_v41  ;;  %1083 = vmatpush.msra.mxu2 %v973_v47  ;;  %v984_v10 = vld [vmem:[%s3251_s22 + $0x180] sm:$0xff]  ;;  %v1010_v11 = vld [vmem:[%s3251_s22 + $0x250] sm:$0xff]  ;;  %v1009_v15 = vld [vmem:[%s3251_s22 + $0x248] sm:$0xff] }
  0x5c   : > { %1065 = vmatpush.msra.mxu1 %v955_v42  ;;  %1103 = vmatpush.msra.mxu3 %v989_v52  ;;  %v1026_v12 = vld [vmem:[%s3251_s22 + $0x2d0] sm:$0xff]  ;;  %v930_v13 = vld [vmem:[%s2555_s20] sm:$0x1f]  ;;  %v1025_v16 = vld [vmem:[%s3251_s22 + $0x2c8] sm:$0xff] }
  0x5d   : > { %1046 = vmatpush.msra.mxu0 %v938_v45  ;;  %1084 = vmatpush.msra.mxu2 %v972_v51  ;;  %v931_v17 = vld [vmem:[%s2555_s20 + $0x8] sm:$0x1f]  ;;  %v1008_v18 = vld [vmem:[%s3251_s22 + $0x240] sm:$0xff]  ;;  %v1007_v20 = vld [vmem:[%s3251_s22 + $0x238] sm:$0xff] }
  0x5e   : > { %1066 = vmatpush.msra.mxu1 %v954_v46  ;;  %1104 = vmatpush.msra.mxu3 %v988_v58  ;;  %v1024_v19 = vld [vmem:[%s3251_s22 + $0x2c0] sm:$0xff]  ;;  %v1023_v21 = vld [vmem:[%s3251_s22 + $0x2b8] sm:$0xff]  ;;  %v1006_v22 = vld [vmem:[%s3251_s22 + $0x230] sm:$0xff] }
  0x5f   : > { %1047 = vmatpush.msra.mxu0 %v937_v49  ;;  %1085 = vmatpush.msra.mxu2 %v971_v57  ;;  %v1022_v23 = vld [vmem:[%s3251_s22 + $0x2b0] sm:$0xff]  ;;  %v1005_v24 = vld [vmem:[%s3251_s22 + $0x228] sm:$0xff]  ;;  %v1004_v26 = vld [vmem:[%s3251_s22 + $0x220] sm:$0xff] }
  0x60   : > { %1067 = vmatpush.msra.mxu1 %v953_v50  ;;  %1105 = vmatpush.msra.mxu3 %v987_v62  ;;  %v1021_v25 = vld [vmem:[%s3251_s22 + $0x2a8] sm:$0xff]  ;;  %v1020_v27 = vld [vmem:[%s3251_s22 + $0x2a0] sm:$0xff]  ;;  %v1003_v28 = vld [vmem:[%s3251_s22 + $0x218] sm:$0xff] }
  0x61   : > { %1048 = vmatpush.msra.mxu0 %v936_v53  ;;  %1086 = vmatpush.msra.mxu2 %v970_v61  ;;  %v1019_v29 = vld [vmem:[%s3251_s22 + $0x298] sm:$0xff]  ;;  %v1002_v30 = vld [vmem:[%s3251_s22 + $0x210] sm:$0xff]  ;;  %v1001_v32 = vld [vmem:[%s3251_s22 + $0x208] sm:$0xff] }
  0x62   : > { %1068 = vmatpush.msra.mxu1 %v952_v54  ;;  %1106 = vmatpush.msra.mxu3 %v986_v2  ;;  %v1018_v31 = vld [vmem:[%s3251_s22 + $0x290] sm:$0xff]  ;;  %v1017_v33 = vld [vmem:[%s3251_s22 + $0x288] sm:$0xff]  ;;  %v1000_v34 = vld [vmem:[%s3251_s22 + $0x200] sm:$0xff] }
  0x63   : > { %1113 = vmatpush.msrb.mxu0 %v1015_v55  ;;  %1087 = vmatpush.msra.mxu2 %v969_v1  ;;  %v1016_v35 = vld [vmem:[%s3251_s22 + $0x280] sm:$0xff]  ;;  %v935_v37 = vld [vmem:[%s2555_s20 + $0x28] sm:$0x1f] }
  0x64   : > { %1133 = vmatpush.msrb.mxu1 %v1031_v56  ;;  %1107 = vmatpush.msra.mxu3 %v985_v6  ;;  %v934_v36 = vld [vmem:[%s2555_s20 + $0x20] sm:$0x1f] }
  0x65   : > { %1114 = vmatpush.msrb.mxu0 %v1014_v59  ;;  %1088 = vmatpush.msra.mxu2 %v968_v5  ;;  %v1032_v38 = vld [vmem:[%s3252_s30] sm:$0x1f] }
  0x66   : > { %1134 = vmatpush.msrb.mxu1 %v1030_v60  ;;  %1089 = vmatmul.f32.vlgmr.msra.gmra.mxu2 %v932_v9 }
  0x67   : > { %1115 = vmatpush.msrb.mxu0 %v1013_v63  ;;  %1108 = vmatpush.msra.mxu3 %v984_v10 }
  0x68   : > { %1135 = vmatpush.msrb.mxu1 %v1029_v0  ;;  %1049 = vmatmul.f32.vlgmr.msra.gmra.mxu0 %v930_v13 }
  0x69   : > { %1116 = vmatpush.msrb.mxu0 %v1012_v3  ;;  %1109 = vmatmul.f32.vlgmr.msra.gmra.mxu3 %v933_v14 }
  0x6a   : > { %1136 = vmatpush.msrb.mxu1 %v1028_v4 }
  0x6b   : > { %1117 = vmatpush.msrb.mxu0 %v1011_v7  ;;  %1069 = vmatmul.f32.vlgmr.msra.gmra.mxu1 %v931_v17 }
  0x6c   : > { %1137 = vmatpush.msrb.mxu1 %v1027_v8 }
  0x6d   : > { %1118 = vmatpush.msrb.mxu0 %v1010_v11 }
  0x6e   : > { %1138 = vmatpush.msrb.mxu1 %v1026_v12 }
  0x6f   : > { %1119 = vmatpush.msrb.mxu0 %v1009_v15 }
  0x70   : > { %1139 = vmatpush.msrb.mxu1 %v1025_v16 }
  0x71   : > { %1120 = vmatpush.msrb.mxu0 %v1008_v18 }
  0x72   : > { %1140 = vmatpush.msrb.mxu1 %v1024_v19 }
  0x73   : > { %1121 = vmatpush.msrb.mxu0 %v1007_v20 }
  0x74   : > { %1141 = vmatpush.msrb.mxu1 %v1023_v21 }
  0x75   : > { %1122 = vmatpush.msrb.mxu0 %v1006_v22 }
  0x76   : > { %1142 = vmatpush.msrb.mxu1 %v1022_v23 }
  0x77   : > { %1123 = vmatpush.msrb.mxu0 %v1005_v24 }
  0x78   : > { %1143 = vmatpush.msrb.mxu1 %v1021_v25 }
  0x79   : > { %1124 = vmatpush.msrb.mxu0 %v1004_v26 }
  0x7a   : > { %1144 = vmatpush.msrb.mxu1 %v1020_v27 }
  0x7b   : > { %1125 = vmatpush.msrb.mxu0 %v1003_v28 }
  0x7c   : > { %1145 = vmatpush.msrb.mxu1 %v1019_v29 }
  0x7d   : > { %1126 = vmatpush.msrb.mxu0 %v1002_v30 }
  0x7e   : > { %1146 = vmatpush.msrb.mxu1 %v1018_v31 }
  0x7f   : > { %1127 = vmatpush.msrb.mxu0 %v1001_v32 }
  0x80   : > { %1147 = vmatpush.msrb.mxu1 %v1017_v33 }
  0x81   : > { %1128 = vmatpush.msrb.mxu0 %v1000_v34 }
  0x82   : > { %1148 = vmatpush.msrb.mxu1 %v1016_v35  ;;  %1129 = vmatmul.f32.vlgmr.msrb.gmra.mxu0 %v934_v36 }
  0x83   : > { %1149 = vmatmul.f32.vlgmr.msrb.gmra.mxu1 %v935_v37 }
  0xe5   : > { %v1050_v39 = vpop.f32.mrf.mxu0 }
  0xe6   : > { %v1051_v40 = vadd.f32 %v1050_v39, %v1032_v38 }
  0xe8   : > { %v1070_v41 = vpop.f32.mrf.mxu1 }
  0xe9   : > { %v1071_v42 = vadd.f32 %v1070_v41, %v1051_v40  ;;  %v1090_v43 = vpop.f32.mrf.mxu2 }
  0xeb   : > { %v1091_v44 = vadd.f32 %v1090_v43, %v1071_v42 }
  0xec   : > { %v1110_v45 = vpop.f32.mrf.mxu3 }
  0xed   : > { %v1111_v46 = vadd.f32 %v1110_v45, %v1091_v44 }
  0xff   : > { %v1130_v47 = vpop.f32.mrf.mxu0 }
 0x100   : > { %v1150_v48 = vpop.f32.mrf.mxu1  ;;  %v1131_v49 = vadd.f32 %v1130_v47, %v1111_v46 }
 0x102   : > { %v1151_v50 = vadd.f32 %v1150_v48, %v1131_v49 }
 0x104   : > { %1154 = vst.msk [vmem:[#allocation2] sm:$0x1f] %vm1153_vm0, %v1151_v50 }
 0x105 PF: > { %vm1158_vm1 = vcmask 520192   ;;  %v2351_v53 = vmov 64.0   ;;  %v1203_v1 = vld [vmem:[%s2561_s18 + $0x38] sm:$0xff]  ;;  %v1202_v4 = vld [vmem:[%s2561_s18 + $0x30] sm:$0xff]  ;;  %v1201_v7 = vld [vmem:[%s2561_s18 + $0x28] sm:$0xff]  ;;  %s3255_s27 = sld [smem:[#allocation22_spill]]  ;;  %s3257_s11 = scalar_lea.vmem %s3176_s6, %s2542_s2 }
 0x106   : > { %2227 = vrcp.f32 %v2351_v53  ;;  %v1239_v2 = vld [vmem:[%s2570_s1 + $0x38] sm:$0xff]  ;;  %1220 = vmatpush.msra.mxu0 %v1203_v1  ;;  %v1238_v5 = vld [vmem:[%s2570_s1 + $0x30] sm:$0xff]  ;;  %v1237_v8 = vld [vmem:[%s2570_s1 + $0x28] sm:$0xff]  ;;  %vm1208_vm6 = vcmask 523264   ;;  %s3258_s21 = sld [smem:[#allocation25_spill]]  ;;  %vm1296_vm7 = vcmask 130048  }
 0x107   : > { %v1271_v3 = vld [vmem:[%s2579_s17 + $0x38] sm:$0xff]  ;;  %1252 = vmatpush.msra.mxu1 %v1239_v2  ;;  %v1270_v6 = vld [vmem:[%s2579_s17 + $0x30] sm:$0xff]  ;;  %v1269_v9 = vld [vmem:[%s2579_s17 + $0x28] sm:$0xff]  ;;  %s2352_s0 = smov 96   ;;  %s2353_s30 = smov 112   ;;  %vm1352_vm8 = vcmask 1044480  }
 0x108   : > { %1284 = vmatpush.msra.mxu2 %v1271_v3  ;;  %1221 = vmatpush.msra.mxu0 %v1202_v4  ;;  %v1200_v10 = vld [vmem:[%s2561_s18 + $0x20] sm:$0xff]  ;;  %v1199_v13 = vld [vmem:[%s2561_s18 + $0x18] sm:$0xff]  ;;  %v1198_v16 = vld [vmem:[%s2561_s18 + $0x10] sm:$0xff]  ;;  %vm1323_vm9 = vcmask 36864   ;;  %vm1348_vm14 = vcmask 39936   ;;  %s2355_s8 = smov 32  }
 0x109   : > { %1253 = vmatpush.msra.mxu1 %v1238_v5  ;;  %v1236_v11 = vld [vmem:[%s2570_s1 + $0x20] sm:$0xff]  ;;  %v1235_v14 = vld [vmem:[%s2570_s1 + $0x18] sm:$0xff]  ;;  %v1234_v17 = vld [vmem:[%s2570_s1 + $0x10] sm:$0xff]  ;;  %s2356_s19 = smov 16   ;;  %s3261_s26 = sld [smem:[#allocation28_spill]] }
 0x10a   : > { %1285 = vmatpush.msra.mxu2 %v1270_v6  ;;  %1222 = vmatpush.msra.mxu0 %v1201_v7  ;;  %v1268_v12 = vld [vmem:[%s2579_s17 + $0x20] sm:$0xff]  ;;  %v1267_v15 = vld [vmem:[%s2579_s17 + $0x18] sm:$0xff]  ;;  %v1266_v18 = vld [vmem:[%s2579_s17 + $0x10] sm:$0xff]  ;;  %s3263_s3 = sld [smem:[#allocation29_spill]] }
 0x10b   : > { %v2923_v51 = vld [vmem:[#allocation2] sm:$0x1f]  ;;  %1254 = vmatpush.msra.mxu1 %v1237_v8  ;;  %v1197_v19 = vld [vmem:[%s2561_s18 + $0x8] sm:$0xff]  ;;  %s3256_s29 = scalar_lea.vmem %s3255_s27, %s2542_s2  ;;  %s2357_s27 = smov 48  }
 0x10c   : > { %v1159_v52 = vsel %vm1158_vm1, %v2923_v51, 0.0  ;;  %v2228_v54 = vpop.eup %2227  ;;  %1286 = vmatpush.msra.mxu2 %v1269_v9  ;;  %1223 = vmatpush.msra.mxu0 %v1200_v10  ;;  %v1233_v20 = vld [vmem:[%s2570_s1 + $0x8] sm:$0xff]  ;;  %v1196_v22 = vld [vmem:[%s2561_s18] sm:$0xff]  ;;  %s3259_s23 = scalar_lea.vmem %s3258_s21, %s2542_s2  ;;  %s3265_s18 = scalar_lea.vmem %s3186_s16, %s2542_s2 }
 0x10d   : > { %1160 = vadd.xlane.f32.xlu0 %v1159_v52  ;;  %v1163_v55 = vmul.f32 64.0, %v2228_v54  ;;  %vm1167_vm2 = vweird.f32 %v2228_v54  ;;  %1255 = vmatpush.msra.mxu1 %v1236_v11  ;;  %v1265_v21 = vld [vmem:[%s2579_s17 + $0x8] sm:$0xff]  ;;  %v1232_v23 = vld [vmem:[%s2570_s1] sm:$0xff]  ;;  %s3253_s1 = sld [smem:[#allocation21_spill]] }
 0x10e   : > { %1287 = vmatpush.msra.mxu2 %v1268_v12  ;;  %1224 = vmatpush.msra.mxu0 %v1199_v13  ;;  %v1264_v24 = vld [vmem:[%s2579_s17] sm:$0xff] }
 0x10f   : > { %v1164_v56 = vsub.f32 1.0, %v1163_v55  ;;  %1256 = vmatpush.msra.mxu1 %v1235_v14  ;;  %v2218_v37 = vld [vmem:[%s3256_s29] ss:$0 sm:$0xff] }
 0x110   : > { %1288 = vmatpush.msra.mxu2 %v1267_v15  ;;  %1225 = vmatpush.msra.mxu0 %v1198_v16  ;;  %v2219_v40 = vld [vmem:[%s3257_s11] ss:$0 sm:$0xff]  ;;  %s3262_s11 = scalar_lea.vmem %s3261_s26, %s2542_s2  ;;  %s3264_s5 = scalar_lea.vmem %s3263_s3, %s2542_s2 }
 0x111   : > { %v1165_v57 = vmul.f32 %v2228_v54, %v1164_v56  ;;  %1257 = vmatpush.msra.mxu1 %v1234_v17  ;;  %v2220_v41 = vld [vmem:[%s3259_s23] ss:$0 sm:$0xff] }
 0x112   : > { %1289 = vmatpush.msra.mxu2 %v1266_v18  ;;  %1226 = vmatpush.msra.mxu0 %v1197_v19 }
 0x113   : > { %v1166_v58 = vadd.f32 %v2228_v54, %v1165_v57  ;;  %1258 = vmatpush.msra.mxu1 %v1233_v20  ;;  %s3254_s17 = scalar_lea.vmem %s3253_s1, %s2542_s2  ;;  %s3260_s1 = scalar_lea.vmem %s3180_s10, %s2542_s2 }
 0x114   : > { %1290 = vmatpush.msra.mxu2 %v1265_v21  ;;  %1227 = vmatpush.msra.mxu0 %v1196_v22  ;;  %v2217_v34 = vld [vmem:[%s3254_s17] ss:$0 sm:$0xff]  ;;  %s2354_s17 = smov 80  }
 0x115   : > { %v2927_v59 = vsel %vm1167_vm2, %v2228_v54, %v1166_v58  ;;  %1259 = vmatpush.msra.mxu1 %v1232_v23  ;;  %v2221_v46 = vld [vmem:[%s3260_s1] ss:$0 sm:$0xff]  ;;  %s3267_s1 = sld [smem:[#allocation8_spill]] }
 0x116   : > { %1291 = vmatpush.msra.mxu2 %v1264_v24 }
 0x11b   : > { %p2129_p1 = scmp.ne.s32.totalorder %s3267_s1, 1 }
 0x180   : > { %v1161_v60 = vpop.xlane.xlu0 %1160 }
 0x181   : > { %v1169_v61 = vmul.f32 %v2927_v59, %v1161_v60 }
 0x183   : > { %v2931_v62 = vsub.f32 %v2923_v51, %v1169_v61 }
 0x185   : > { %v1171_v63 = vmul.f32 %v2931_v62, %v2931_v62 }
 0x187   : > { %v1172_v0 = vsel %vm1158_vm1, %v1171_v63, 0.0 }
 0x188   : > { %1173 = vadd.xlane.f32.xlu0 %v1172_v0 }
 0x1fb   : > { %v1174_v25 = vpop.xlane.xlu0 %1173 }
 0x1fc   : > { %v1175_v26 = vmul.f32 %v1174_v25, %v2927_v59 }
 0x1fe   : > { %v1176_v27 = vadd.f32 1e-06, %v1175_v26 }
 0x200   : > { %2229 = vrsqrt.f32 %v1176_v27  ;;  %vm1183_vm4 = vweird.f32 %v1176_v27 }
 0x206   : > { %v2230_v28 = vpop.eup %2229 }
 0x207   : > { %v1178_v29 = vmul.f32 %v2230_v28, %v1176_v27  ;;  %vm1184_vm3 = vweird.f32 %v2230_v28 }
 0x208   : > { %vm1185_vm5 = vmor %vm1183_vm4, %vm1184_vm3 }
 0x209   : > { %v1179_v30 = vmul.f32 %v2230_v28, %v1178_v29 }
 0x20b   : > { %v1180_v31 = vmul.f32 0.5, %v1179_v30 }
 0x20d   : > { %v1181_v32 = vsub.f32 1.5, %v1180_v31 }
 0x20f   : > { %v1182_v33 = vmul.f32 %v2230_v28, %v1181_v32 }
 0x211   : > { %v1186_v35 = vsel %vm1185_vm5, %v2230_v28, %v1182_v33 }
 0x212   : > { %v1187_v36 = vmul.f32 %v1186_v35, %v2931_v62 }
 0x214   : > { %v1191_v38 = vmul.f32 %v2217_v34, %v1187_v36 }
 0x216   : > { %v1195_v39 = vadd.f32 %v2218_v37, %v1191_v38 }
 0x218   : > { %2108 = vmatmul.msk.f32.vlgmr.msra.gmra.mxu0 %vm1208_vm6, %v1195_v39  ;;  %2109 = vmatmul.msk.f32.vlgmr.msra.gmra.mxu1 %vm1208_vm6, %v1195_v39 }
 0x219   : > { %2110 = vmatmul.msk.f32.vlgmr.msra.gmra.mxu2 %vm1208_vm6, %v1195_v39 }
 0x295   : > { %v1229_v42 = vpop.f32.mrf.mxu0  ;;  %v1261_v43 = vpop.f32.mrf.mxu1 }
 0x296   : > { %v1230_v44 = vadd.f32 %v2219_v40, %v1229_v42  ;;  %v1262_v45 = vadd.f32 %v2220_v41, %v1261_v43 }
 0x298   : > { %1457 = vrot.lane.b32.xlu2 %v1262_v45, %s2352_s0  ;;  %1378 = vrot.lane.b32.xlu1 %v1262_v45, %s2353_s30 }
 0x299   : > { %2111 = vmatpush.xpose.msk.msrb.mxu0 %vm1296_vm7, %v1262_v45  ;;  %1455 = vrot.lane.b32.xlu0 %v1230_v44, %s2352_s0 }
 0x29c   : > { %v1293_v47 = vpop.f32.mrf.mxu2  ;;  %2112 = vmatmul.msk.f32.vlgmr.msrb.gmra.mxu0 %vm1296_vm7, %v1230_v44 }
 0x29d   : > { %v2995_v48 = vadd.f32 %v2221_v46, %v1293_v47 }
 0x29f   : > { %2113 = vmatpush.msk.msra.mxu0 %vm1352_vm8, %v2995_v48 }
 0x2a0   : > { %1536 = vrot.lane.b32.xlu2 %v1262_v45, %s2354_s17  ;;  %1376 = vrot.lane.b32.xlu1 %v1230_v44, %s2353_s30 }
 0x2a8   : > { %1534 = vrot.lane.b32.xlu1 %v1230_v44, %s2354_s17 }
 0x2f2   : > { %v1458_v49 = vpop.permute.xlu2 %1457 }
 0x2f3   : > { %2119 = vmatpush.xpose.msk.msrb.mxu1 %vm1296_vm7, %v1458_v49 }
 0x2fa   : > { %v1537_v52 = vpop.permute.xlu2 %1536 }
 0x30a   : > { %v1379_v50 = vpop.permute.xlu1 %1378 }
 0x30b   : > { %v1456_v53 = vpop.permute.xlu0 %1455  ;;  %2115 = vmatpush.xpose.msk.msra.mxu3 %vm1296_vm7, %v1379_v50 }
 0x30c   : > { %2120 = vmatmul.msk.f32.vlgmr.msrb.gmra.mxu1 %vm1296_vm7, %v1456_v53 }
 0x30f   : > { %2123 = vmatpush.xpose.msk.msrb.mxu3 %vm1296_vm7, %v1537_v52 }
 0x312   : > { %v1377_v54 = vpop.permute.xlu1 %1376 }
 0x313   : > { %2116 = vmatmul.msk.f32.vlgmr.msra.gmra.mxu3 %vm1296_vm7, %v1377_v54 }
 0x319   : > { %v1320_v55 = vpop.f32.mrf.mxu0 }
 0x31a   : > { %v1535_v56 = vpop.permute.xlu1 %1534  ;;  %v1324_v57 = vsel %vm1323_vm9, %v1320_v55, -inf }
 0x31b   : > { %1325 = vmax.xlane.f32.xlu2 %v1324_v57  ;;  %2124 = vmatmul.msk.f32.vlgmr.msrb.gmra.mxu3 %vm1296_vm7, %v1535_v56 }
 0x389   : > { %v1480_v58 = vpop.f32.mrf.mxu1 }
 0x38a   : > { %v1483_v60 = vsel %vm1323_vm9, %v1480_v58, -inf }
 0x38b   : > { %1484 = vmax.xlane.f32.xlu0 %v1483_v60 }
 0x38e   : > { %v1326_v61 = vpop.xlane.xlu2 %1325 }
 0x38f   : > { %v1327_v62 = vsub.f32 %v1320_v55, %v1326_v61 }
 0x391   : > { %v1328_v1 = vmul.f32 1.442695, %v1327_v62 }
 0x393   : > { %2231 = vpow2.f32 %v1328_v1 }
 0x396   : > { %v1401_v63 = vpop.f32.mrf.mxu3 }
 0x397   : > { %v1404_v0 = vsel %vm1323_vm9, %v1401_v63, -inf }
 0x398   : > { %1405 = vmax.xlane.f32.xlu1 %v1404_v0 }
 0x399   : > { %v2232_v4 = vpop.eup %2231 }
 0x39a   : > { %v1330_v5 = vsel %vm1323_vm9, %v2232_v4, 0.0 }
 0x39e   : > { %v1559_v2 = vpop.f32.mrf.mxu3 }
 0x39f   : > { %1428 = vrot.lane.b32.xlu0 %v2995_v48, %s2353_s30  ;;  %v1562_v3 = vsel %vm1323_vm9, %v1559_v2, -inf }
 0x3a0   : > { %1563 = vmax.xlane.f32.xlu2 %v1562_v3 }
 0x3a8   : > { %1331 = vadd.xlane.f32.xlu2 %v1330_v5 }
 0x3fe   : > { %v1485_v6 = vpop.xlane.xlu0 %1484 }
 0x3ff   : > { %v1486_v7 = vsub.f32 %v1480_v58, %v1485_v6 }
 0x401   : > { %v1487_v8 = vmul.f32 1.442695, %v1486_v7 }
 0x403   : > { %2233 = vpow2.f32 %v1487_v8 }
 0x409   : > { %v2234_v9 = vpop.eup %2233 }
 0x40a   : > { %v1489_v10 = vsel %vm1323_vm9, %v2234_v9, 0.0 }
 0x40b   : > { %1490 = vadd.xlane.f32.xlu2 %v1489_v10  ;;  %v1406_v11 = vpop.xlane.xlu1 %1405 }
 0x40c   : > { %v1407_v12 = vsub.f32 %v1401_v63, %v1406_v11 }
 0x40e   : > { %v1408_v13 = vmul.f32 1.442695, %v1407_v12 }
 0x410   : > { %2235 = vpow2.f32 %v1408_v13 }
 0x411   : > { %v1429_v14 = vpop.permute.xlu0 %1428 }
 0x412   : > { %2117 = vmatpush.msk.msrb.mxu0 %vm1352_vm8, %v1429_v14  ;;  %v1637_v14 = vld [vmem:[%s2588_s4 + $0x38] sm:$0xff] }
 0x413   : > { %v1564_v15 = vpop.xlane.xlu2 %1563  ;;  %1649 = vmatpush.msra.mxu1 %v1637_v14  ;;  %v1779_v14 = vld [vmem:[%s2619_s13 + $0x30] sm:$0xff] }
 0x414   : > { %v1565_v16 = vsub.f32 %v1559_v2, %v1564_v15  ;;  %v1636_v15 = vld [vmem:[%s2588_s4 + $0x30] sm:$0xff] }
 0x415   : > { %1650 = vmatpush.msra.mxu1 %v1636_v15  ;;  %v1778_v15 = vld [vmem:[%s2619_s13 + $0x28] sm:$0xff] }
 0x416   : > { %v3017_v17 = vpop.eup %2235  ;;  %v1566_v18 = vmul.f32 1.442695, %v1565_v16  ;;  %v1635_v16 = vld [vmem:[%s2588_s4 + $0x28] sm:$0xff] }
 0x417   : > { %v1410_v19 = vsel %vm1323_vm9, %v3017_v17, 0.0  ;;  %1651 = vmatpush.msra.mxu1 %v1635_v16  ;;  %v1777_v16 = vld [vmem:[%s2619_s13 + $0x20] sm:$0xff] }
 0x418   : > { %2237 = vpow2.f32 %v1566_v18  ;;  %1411 = vadd.xlane.f32.xlu1 %v1410_v19  ;;  %v1633_v18 = vld [vmem:[%s2588_s4 + $0x18] sm:$0xff]  ;;  %v1632_v19 = vld [vmem:[%s2588_s4 + $0x10] sm:$0xff] }
 0x41b   : > { %v1332_v20 = vpop.xlane.xlu2 %1331 }
 0x41c   : > { %2239 = vrcp.f32 %v1332_v20  ;;  %v1344_v26 = vand.u32 2147483648, %v1332_v20  ;;  %v1342_v28 = vand.u32 2147483647, %v1332_v20  ;;  %vm1338_vm11 = vweird.f32 %v1332_v20 }
 0x41e   : > { %v3021_v21 = vpop.eup %2237  ;;  %v1345_v30 = vor.u32 1.1754944e-38, %v1344_v26  ;;  %vm1343_vm13 = vcmp.eq.f32.partialorder %v1342_v28, 8.507059e+37  ;;  %v2222_v28 = vld [vmem:[%s3262_s11] ss:$0 sm:$0xff] }
 0x41f   : > { %v1568_v22 = vsel %vm1323_vm9, %v3021_v21, 0.0 }
 0x420   : > { %1569 = vadd.xlane.f32.xlu1 %v1568_v22 }
 0x422   : > { %v2240_v23 = vpop.eup %2239 }
 0x423   : > { %v1334_v24 = vmul.f32 %v2240_v23, %v1332_v20  ;;  %1507 = vrot.lane.b32.xlu2 %v2995_v48, %s2352_s0  ;;  %vm1339_vm10 = vweird.f32 %v2240_v23  ;;  %v1631_v20 = vld [vmem:[%s2588_s4 + $0x8] sm:$0xff] }
 0x424   : > { %vm1340_vm12 = vmor %vm1338_vm11, %vm1339_vm10 }
 0x425   : > { %v1335_v25 = vsub.f32 1.0, %v1334_v24 }
 0x427   : > { %v1336_v27 = vmul.f32 %v2240_v23, %v1335_v25 }
 0x429   : > { %v1337_v29 = vadd.f32 %v2240_v23, %v1336_v27 }
 0x42b   : > { %v1341_v31 = vsel %vm1340_vm12, %v2240_v23, %v1337_v29 }
 0x42c   : > { %v1346_v32 = vsel %vm1343_vm13, %v1345_v30, %v1341_v31 }
 0x42d   : > { %v1347_v33 = vmul.f32 %v2232_v4, %v1346_v32 }
 0x42f   : > { %2114 = vmatmul.msk.f32.vlgmr.msra.gmra.mxu0 %vm1348_vm14, %v1347_v33 }
 0x439   : > { %1586 = vrot.lane.b32.xlu1 %v2995_v48, %s2354_s17  ;;  %s3268_s17 = sld [smem:[#allocation32_spill]] (!%p2129_p1) }
 0x47e   : > { %v1491_v34 = vpop.xlane.xlu2 %1490 }
 0x47f   : > { %2241 = vrcp.f32 %v1491_v34  ;;  %v1503_v39 = vand.u32 2147483648, %v1491_v34  ;;  %v1501_v41 = vand.u32 2147483647, %v1491_v34  ;;  %vm1497_vm0 = vweird.f32 %v1491_v34 }
 0x481   : > { %v1504_v44 = vor.u32 1.1754944e-38, %v1503_v39  ;;  %vm1502_vm3 = vcmp.eq.f32.partialorder %v1501_v41, 8.507059e+37  ;;  %v1704_v39 = vld [vmem:[%s2605_s28 + $0x28] sm:$0xff]  ;;  %v1702_v41 = vld [vmem:[%s2605_s28 + $0x18] sm:$0xff] }
 0x485   : > { %v2242_v35 = vpop.eup %2241 }
 0x486   : > { %v1493_v36 = vmul.f32 %v2242_v35, %v1491_v34  ;;  %v1508_v37 = vpop.permute.xlu2 %1507  ;;  %vm1498_vm15 = vweird.f32 %v2242_v35 }
 0x487   : > { %2121 = vmatpush.msk.msrb.mxu2 %vm1352_vm8, %v1508_v37  ;;  %vm1499_vm2 = vmor %vm1497_vm0, %vm1498_vm15 }
 0x488   : > { %v1494_v38 = vsub.f32 1.0, %v1493_v36 }
 0x48a   : > { %v1495_v40 = vmul.f32 %v2242_v35, %v1494_v38  ;;  %v1705_v38 = vld [vmem:[%s2605_s28 + $0x30] sm:$0xff] }
 0x48b   : > { %v1412_v42 = vpop.xlane.xlu1 %1411 }
 0x48c   : > { %v1496_v43 = vadd.f32 %v2242_v35, %v1495_v40  ;;  %2243 = vrcp.f32 %v1412_v42  ;;  %v1424_v53 = vand.u32 2147483648, %v1412_v42  ;;  %v1422_v55 = vand.u32 2147483647, %v1412_v42  ;;  %v1703_v40 = vld [vmem:[%s2605_s28 + $0x20] sm:$0xff] }
 0x48d   : > { %vm1418_vm5 = vweird.f32 %v1412_v42 }
 0x48e   : > { %v1500_v45 = vsel %vm1499_vm2, %v2242_v35, %v1496_v43  ;;  %v1425_v58 = vor.u32 1.1754944e-38, %v1424_v53  ;;  %vm1423_vm10 = vcmp.eq.f32.partialorder %v1422_v55, 8.507059e+37  ;;  %v1700_v43 = vld [vmem:[%s2605_s28 + $0x8] sm:$0xff]  ;;  %v2223_v55 = vld [vmem:[%s3264_s5] ss:$0 sm:$0xff] }
 0x48f   : > { %v1505_v46 = vsel %vm1502_vm3, %v1504_v44, %v1500_v45  ;;  %v1699_v44 = vld [vmem:[%s2605_s28] sm:$0xff] }
 0x490   : > { %v1506_v47 = vmul.f32 %v2234_v9, %v1505_v46 }
 0x492   : > { %v2244_v48 = vpop.eup %2243  ;;  %2122 = vmatmul.msk.f32.vlgmr.msrb.gmra.mxu2 %vm1348_vm14, %v1506_v47 }
 0x493   : > { %v1414_v49 = vmul.f32 %v2244_v48, %v1412_v42  ;;  %v1570_v50 = vpop.xlane.xlu1 %1569  ;;  %vm1419_vm4 = vweird.f32 %v2244_v48  ;;  %v1701_v42 = vld [vmem:[%s2605_s28 + $0x10] sm:$0xff] }
 0x494   : > { %2245 = vrcp.f32 %v1570_v50  ;;  %vm1420_vm9 = vmor %vm1418_vm5, %vm1419_vm4  ;;  %v1582_v3 = vand.u32 2147483648, %v1570_v50  ;;  %vm1576_vm12 = vweird.f32 %v1570_v50  ;;  %v1580_v4 = vand.u32 2147483647, %v1570_v50 }
 0x495   : > { %v1415_v52 = vsub.f32 1.0, %v1414_v49 }
 0x496   : > { %v1583_v6 = vor.u32 1.1754944e-38, %v1582_v3  ;;  %vm1581_vm15 = vcmp.eq.f32.partialorder %v1580_v4, 8.507059e+37  ;;  %v1785_v3 = vld [vmem:[%s2619_s13 + $0x60] sm:$0xff] }
 0x497   : > { %v1416_v54 = vmul.f32 %v2244_v48, %v1415_v52 }
 0x499   : > { %v1417_v56 = vadd.f32 %v2244_v48, %v1416_v54 }
 0x49a   : > { %v2246_v57 = vpop.eup %2245 }
 0x49b   : > { %v1421_v60 = vsel %vm1420_vm9, %v2244_v48, %v1417_v56  ;;  %v1572_v61 = vmul.f32 %v2246_v57, %v1570_v50  ;;  %vm1577_vm11 = vweird.f32 %v2246_v57 }
 0x49c   : > { %v1426_v62 = vsel %vm1423_vm10, %v1425_v58, %v1421_v60  ;;  %vm1578_vm13 = vmor %vm1576_vm12, %vm1577_vm11  ;;  %v2224_v58 = vld [vmem:[%s909_s9] ss:$0 sm:$0xff] }
 0x49d   : > { %v1573_v63 = vsub.f32 1.0, %v1572_v61  ;;  %v1427_v0 = vmul.f32 %v3017_v17, %v1426_v62  ;;  %v1634_v17 = vld [vmem:[%s2588_s4 + $0x20] sm:$0xff]  ;;  %v1788_v62 = vld [vmem:[%s2619_s13 + $0x78] sm:$0xff] }
 0x49e   : > { %1652 = vmatpush.msra.mxu1 %v1634_v17  ;;  %1789 = vmatpush.msra.mxu3 %v1788_v62 }
 0x49f   : > { %v1574_v1 = vmul.f32 %v2246_v57, %v1573_v63  ;;  %2118 = vmatmul.msk.f32.vlgmr.msrb.gmra.mxu0 %vm1348_vm14, %v1427_v0  ;;  %v1787_v63 = vld [vmem:[%s2619_s13 + $0x70] sm:$0xff]  ;;  %v2225_v0 = vld [vmem:[%s3265_s18] ss:$0 sm:$0xff] }
 0x4a0   : > { %1653 = vmatpush.msra.mxu1 %v1633_v18  ;;  %1790 = vmatpush.msra.mxu3 %v1787_v63 }
 0x4a1   : > { %v1575_v2 = vadd.f32 %v2246_v57, %v1574_v1  ;;  %v1786_v1 = vld [vmem:[%s2619_s13 + $0x68] sm:$0xff] }
 0x4a2   : > { %1654 = vmatpush.msra.mxu1 %v1632_v19  ;;  %1791 = vmatpush.msra.mxu3 %v1786_v1  ;;  %v1776_v19 = vld [vmem:[%s2619_s13 + $0x18] sm:$0xff] }
 0x4a3   : > { %v1579_v5 = vsel %vm1578_vm13, %v2246_v57, %v1575_v2 }
 0x4a4   : > { %v1584_v7 = vsel %vm1581_vm15, %v1583_v6, %v1579_v5  ;;  %1655 = vmatpush.msra.mxu1 %v1631_v20  ;;  %1792 = vmatpush.msra.mxu3 %v1785_v3  ;;  %v1784_v5 = vld [vmem:[%s2619_s13 + $0x58] sm:$0xff] }
 0x4a5   : > { %v1585_v9 = vmul.f32 %v3021_v21, %v1584_v7  ;;  %v1630_v21 = vld [vmem:[%s2588_s4] sm:$0xff]  ;;  %v1783_v7 = vld [vmem:[%s2619_s13 + $0x50] sm:$0xff] }
 0x4a6   : > { %1656 = vmatpush.msra.mxu1 %v1630_v21  ;;  %1793 = vmatpush.msra.mxu3 %v1784_v5  ;;  %v1775_v21 = vld [vmem:[%s2619_s13 + $0x10] sm:$0xff] }
 0x4a8   : > { %1794 = vmatpush.msra.mxu3 %v1783_v7 }
 0x4ab   : > { %v1587_v8 = vpop.permute.xlu1 %1586 }
 0x4ac   : > { %2125 = vmatpush.msk.msra.mxu0 %vm1352_vm8, %v1587_v8  ;;  %v1373_v10 = vpop.f32.mrf.mxu0  ;;  %vm1626_vm8 = vcmask 261120  }
 0x4ad   : > { %2126 = vmatmul.msk.f32.vlgmr.msra.gmra.mxu0 %vm1348_vm14, %v1585_v9  ;;  %vm1628_vm14 = vcmask 392192   ;;  %v1782_v9 = vld [vmem:[%s2619_s13 + $0x48] sm:$0xff] }
 0x4ae   : > { %1795 = vmatpush.msra.mxu3 %v1782_v9 }
 0x515   : > { %v1531_v11 = vpop.f32.mrf.mxu2 }
 0x516   : > { %1618 = vrot.lane.b32.xlu2 %v1531_v11, %s2355_s8  ;;  %v1781_v11 = vld [vmem:[%s2619_s13 + $0x40] sm:$0xff] }
 0x517   : > { %1796 = vmatpush.msra.mxu3 %v1781_v11 }
 0x51c   : > { %v1452_v12 = vpop.f32.mrf.mxu0 }
 0x51d   : > { %1614 = vrot.lane.b32.xlu0 %v1452_v12, %s2356_s19 }
 0x52a   : > { %v1610_v13 = vpop.f32.mrf.mxu0 }
 0x52b   : > { %1622 = vrot.lane.b32.xlu0 %v1610_v13, %s2357_s27  ;;  %v1780_v13 = vld [vmem:[%s2619_s13 + $0x38] sm:$0xff]  ;;  %s3269_s27 = sld [smem:[#allocation33_spill]] (!%p2129_p1) }
 0x52c   : > { %1797 = vmatpush.msra.mxu3 %v1780_v13 }
 0x52e   : > { %1798 = vmatpush.msra.mxu3 %v1779_v14 }
 0x530   : > { %1799 = vmatpush.msra.mxu3 %v1778_v15 }
 0x532   : > { %1800 = vmatpush.msra.mxu3 %v1777_v16 }
 0x534   : > { %1801 = vmatpush.msra.mxu3 %v1776_v19 }
 0x536   : > { %1802 = vmatpush.msra.mxu3 %v1775_v21 }
 0x570   : > { %v1619_v24 = vpop.permute.xlu2 %1618 }
 0x58f   : > { %v1615_v22 = vpop.permute.xlu0 %1614 }
 0x590   : > { %v1625_v23 = vsel %vm1296_vm7, %v1373_v10, %v1615_v22 }
 0x591   : > { %v1627_v26 = vsel %vm1626_vm8, %v1625_v23, %v1619_v24 }
 0x59d   : > { %v1623_v25 = vpop.permute.xlu0 %1622 }
 0x59e   : > { %v1629_v27 = vsel %vm1628_vm14, %v1627_v26, %v1623_v25  ;;  %v1774_v25 = vld [vmem:[%s2619_s13 + $0x8] sm:$0xff]  ;;  %v1773_v26 = vld [vmem:[%s2619_s13] sm:$0xff] }
 0x59f   : > { %2127 = vmatmul.msk.f32.vlgmr.msra.gmra.mxu1 %vm1208_vm6, %v1629_v27  ;;  %1803 = vmatpush.msra.mxu3 %v1774_v25 }
 0x5a1   : > { %1804 = vmatpush.msra.mxu3 %v1773_v26 }
 0x61c   : > { %v1658_v29 = vpop.f32.mrf.mxu1 }
 0x61d   : > { %v1661_v30 = vadd.f32 %v1658_v29, %v2923_v51  ;;  %v1706_v51 = vld [vmem:[%s2605_s28 + $0x38] sm:$0xff] }
 0x61e   : > { %1722 = vmatpush.msra.mxu2 %v1706_v51 }
 0x61f   : > { %v3053_v31 = vadd.f32 %v2222_v28, %v1661_v30 }
 0x620   : > { %1723 = vmatpush.msra.mxu2 %v1705_v38 }
 0x621   : > { %v1669_v32 = vsel %vm1158_vm1, %v3053_v31, 0.0 }
 0x622   : > { %1670 = vadd.xlane.f32.xlu1 %v1669_v32  ;;  %1724 = vmatpush.msra.mxu2 %v1704_v39 }
 0x624   : > { %1725 = vmatpush.msra.mxu2 %v1703_v40 }
 0x626   : > { %1726 = vmatpush.msra.mxu2 %v1702_v41 }
 0x628   : > { %1727 = vmatpush.msra.mxu2 %v1701_v42 }
 0x62a   : > { %1728 = vmatpush.msra.mxu2 %v1700_v43 }
 0x62c   : > { %1729 = vmatpush.msra.mxu2 %v1699_v44 }
 0x695   : > { %v1671_v33 = vpop.xlane.xlu1 %1670 }
 0x696   : > { %v1672_v34 = vmul.f32 %v1671_v33, %v2927_v59 }
 0x698   : > { %v1673_v35 = vsub.f32 %v3053_v31, %v1672_v34 }
 0x69a   : > { %v1674_v36 = vmul.f32 %v1673_v35, %v1673_v35 }
 0x69c   : > { %v1675_v37 = vsel %vm1158_vm1, %v1674_v36, 0.0 }
 0x69d   : > { %1676 = vadd.xlane.f32.xlu2 %v1675_v37 }
 0x710   : > { %v1677_v45 = vpop.xlane.xlu2 %1676 }
 0x711   : > { %v1678_v46 = vmul.f32 %v1677_v45, %v2927_v59 }
 0x713   : > { %v1679_v47 = vadd.f32 1e-06, %v1678_v46 }
 0x715   : > { %2247 = vrsqrt.f32 %v1679_v47  ;;  %vm1686_vm0 = vweird.f32 %v1679_v47 }
 0x71b   : > { %v2248_v48 = vpop.eup %2247 }
 0x71c   : > { %v1681_v49 = vmul.f32 %v2248_v48, %v1679_v47  ;;  %vm1687_vm7 = vweird.f32 %v2248_v48 }
 0x71d   : > { %vm1688_vm2 = vmor %vm1686_vm0, %vm1687_vm7 }
 0x71e   : > { %v1682_v50 = vmul.f32 %v2248_v48, %v1681_v49 }
 0x720   : > { %v1683_v52 = vmul.f32 0.5, %v1682_v50 }
 0x722   : > { %v1684_v53 = vsub.f32 1.5, %v1683_v52  ;;  %v2226_v52 = vld [vmem:[%s925_s12] ss:$0 sm:$0xff] }
 0x724   : > { %v1685_v54 = vmul.f32 %v2248_v48, %v1684_v53 }
 0x726   : > { %v1689_v56 = vsel %vm1688_vm2, %v2248_v48, %v1685_v54 }
 0x727   : > { %v1690_v57 = vmul.f32 %v1689_v56, %v1673_v35 }
 0x729   : > { %v1694_v60 = vmul.f32 %v2223_v55, %v1690_v57 }
 0x72b   : > { %v1698_v61 = vadd.f32 %v2224_v58, %v1694_v60 }
 0x72d   : > { %2128 = vmatmul.msk.f32.vlgmr.msra.gmra.mxu2 %vm1208_vm6, %v1698_v61 }
 0x7b0   : > { %v1731_v2 = vpop.f32.mrf.mxu2 }
 0x7b1   : > { %v3089_v4 = vadd.f32 %v2225_v0, %v1731_v2 }
 0x7b3   : > { %v1735_v6 = vmul.f32 0.70710677, %v3089_v4  ;;  %v1734_v48 = vmul.f32 0.5, %v3089_v4 }
 0x7b5   : > { %v1736_v8 = vand.u32 2147483647, %v1735_v6  ;;  %vm1768_vm9 = vcmp.lt.f32.partialorder %v1735_v6, 0.0 }
 0x7b7   : > { %v1737_v10 = vmul.f32 0.3275911, %v1736_v8  ;;  %v1762_v32 = vsub.f32 0.0, %v1736_v8 }
 0x7b9   : > { %v1738_v12 = vadd.f32 1.0, %v1737_v10  ;;  %v1763_v35 = vmul.f32 %v1762_v32, %v1736_v8 }
 0x7bb   : > { %2249 = vrcp.f32 %v1738_v12  ;;  %v1750_v22 = vand.u32 2147483648, %v1738_v12  ;;  %v1748_v24 = vand.u32 2147483647, %v1738_v12  ;;  %vm1744_vm3 = vweird.f32 %v1738_v12 }
 0x7bc   : > { %v1764_v51 = vmul.f32 1.442695, %v1763_v35 }
 0x7bd   : > { %v1751_v28 = vor.u32 1.1754944e-38, %v1750_v22  ;;  %vm1749_vm5 = vcmp.eq.f32.partialorder %v1748_v24, 8.507059e+37 }
 0x7be   : > { %2251 = vpow2.f32 %v1764_v51 }
 0x7c1   : > { %v2250_v17 = vpop.eup %2249 }
 0x7c2   : > { %v1740_v18 = vmul.f32 %v2250_v17, %v1738_v12  ;;  %vm1745_vm6 = vweird.f32 %v2250_v17 }
 0x7c3   : > { %vm1746_vm4 = vmor %vm1744_vm3, %vm1745_vm6 }
 0x7c4   : > { %v1741_v20 = vsub.f32 1.0, %v1740_v18  ;;  %v2252_v43 = vpop.eup %2251 }
 0x7c6   : > { %v1742_v23 = vmul.f32 %v2250_v17, %v1741_v20 }
 0x7c8   : > { %v1743_v27 = vadd.f32 %v2250_v17, %v1742_v23 }
 0x7ca   : > { %v1747_v29 = vsel %vm1746_vm4, %v2250_v17, %v1743_v27 }
 0x7cb   : > { %v1752_v30 = vsel %vm1749_vm5, %v1751_v28, %v1747_v29 }
 0x7cc   : > { %v1753_v33 = vmul.f32 1.0614054, %v1752_v30 }
 0x7ce   : > { %v1754_v34 = vadd.f32 -1.4531521, %v1753_v33 }
 0x7d0   : > { %v1755_v36 = vmul.f32 %v1754_v34, %v1752_v30 }
 0x7d2   : > { %v1756_v37 = vadd.f32 1.4214138, %v1755_v36 }
 0x7d4   : > { %v1757_v38 = vmul.f32 %v1756_v37, %v1752_v30 }
 0x7d6   : > { %v1758_v39 = vadd.f32 -0.28449672, %v1757_v38 }
 0x7d8   : > { %v1759_v40 = vmul.f32 %v1758_v39, %v1752_v30 }
 0x7da   : > { %v1760_v41 = vadd.f32 0.2548296, %v1759_v40 }
 0x7dc   : > { %v1761_v42 = vmul.f32 %v1760_v41, %v1752_v30 }
 0x7de   : > { %v1766_v44 = vmul.f32 %v2252_v43, %v1761_v42 }
 0x7e0   : > { %v1767_v45 = vsub.f32 1.0, %v1766_v44 }
 0x7e2   : > { %v1769_v46 = vsub.f32 0.0, %v1767_v45 }
 0x7e4   : > { %v1770_v47 = vsel %vm1768_vm9, %v1769_v46, %v1767_v45 }
 0x7e5   : > { %v1771_v49 = vadd.f32 1.0, %v1770_v47 }
 0x7e7   : > { %v1772_v50 = vmul.f32 %v1771_v49, %v1734_v48 }
 0x7e9   : > { %1805 = vmatmul.f32.vlgmr.msra.gmra.mxu3 %v1772_v50 }
 0x86c   : > { %v1806_v53 = vpop.f32.mrf.mxu3 }
 0x86d   : > { %v1809_v54 = vadd.f32 %v1806_v53, %v3053_v31  ;;  %1819 = sbr.rel (%p2129_p1) target bundleno = 2432 (0x980), region = 112 }
 0x86f   : > { %v1814_v55 = vadd.f32 %v2226_v52, %v1809_v54 }
 0x871   : > { %1815 = vst.msk [vmem:[#allocation2] sm:$0x1f] %vm1158_vm1, %v1814_v55 }
 0x872   : > { %vm1822_vm10 = vcmask 516096   ;;  %v1820_v7 = vld [vmem:[%s3268_s17] sm:$0x1] }
 0x873   : > { %v1823_v56 = vsel %vm1822_vm10, %v1814_v55, 0.0 }
 0x874   : > { %1824 = vadd.xlane.f32.xlu0 %v1823_v56 }
 0x8e7   : > { %v1825_v57 = vpop.xlane.xlu0 %1824 }
 0x8e8   : > { %v1826_v58 = vmul.f32 %v1825_v57, %v2927_v59 }
 0x8ea   : > { %v1827_v60 = vsub.f32 %v1814_v55, %v1826_v58 }
 0x8ec   : > { %v1828_v61 = vmul.f32 %v1827_v60, %v1827_v60 }
 0x8ee   : > { %v1829_v62 = vsel %vm1822_vm10, %v1828_v61, 0.0 }
 0x8ef   : > { %1830 = vadd.xlane.f32.xlu0 %v1829_v62 }
 0x962   : > { %v1831_v63 = vpop.xlane.xlu0 %1830 }
 0x963   : > { %v1832_v31 = vmul.f32 %v1831_v63, %v2927_v59  ;;  %v1821_v59 = vld [vmem:[%s3269_s27] sm:$0x1] }
 0x965   : > { %v1833_v0 = vadd.f32 1e-06, %v1832_v31 }
 0x967   : > { %2253 = vrsqrt.f32 %v1833_v0  ;;  %vm1840_vm11 = vweird.f32 %v1833_v0 }
 0x96d   : > { %v2254_v1 = vpop.eup %2253 }
 0x96e   : > { %v1835_v2 = vmul.f32 %v2254_v1, %v1833_v0  ;;  %vm1841_vm1 = vweird.f32 %v2254_v1 }
 0x96f   : > { %vm1842_vm12 = vmor %vm1840_vm11, %vm1841_vm1 }
 0x970   : > { %v1836_v3 = vmul.f32 %v2254_v1, %v1835_v2 }
 0x972   : > { %v1837_v4 = vmul.f32 0.5, %v1836_v3 }
 0x974   : > { %v1838_v5 = vsub.f32 1.5, %v1837_v4 }
 0x976   : > { %v1839_v6 = vmul.f32 %v2254_v1, %v1838_v5 }
 0x978   : > { %v1843_v8 = vsel %vm1842_vm12, %v2254_v1, %v1839_v6 }
 0x979   : > { %v1844_v9 = vmul.f32 %v1843_v8, %v1827_v60 }
 0x97b   : > { %v1845_v10 = vmul.f32 %v1844_v9, %v1820_v7 }
 0x97d   : > { %v1846_v11 = vadd.f32 %v1845_v10, %v1821_v59 }
 0x97f   : > { %1847 = vst.msk [vmem:[%s2623_s24] sm:$0x1] %vm1822_vm10, %v1846_v11 }
 0x980 PF: > { %s3270_s29 = sld [smem:[#allocation9_spill]]  ;;  %s1859_s3 = sshll.u32 %s2623_s24, 4  ;;  %s1860_s3 = int_to_ptr.vmem [resolvable:$true] %s1859_s3 }
 0x981   : > { %s3271_s11 = sld [smem:[#allocation34_spill]]  ;;  %s3273_s21 = sand.u32 1, %s2325_s25  }
 0x982   : > { %s1849_s23 = scalar_lea.sflag [#allocation4], %s3273_s21 }
 0x987   : > { %s1857_s28 = scalar_lea.hbm %s3271_s11, %s3270_s29  ;;  %s2275_s13 = scalar_lea.hbm %s3271_s11, 2 }
 0x988   : > { %s1861_s5 = sshll.u32 %s1857_s28, 4  ;;  %s1862_s5 = int_to_ptr.hbm [resolvable:$true] %s1861_s5 }
 0x989   : > { %s2269_s0 = sshra.s32 %s1862_s5, 4  ;;  %s2270_s0 = int_to_ptr.hbm [resolvable:$true] %s2269_s0 }
 0x98a   : > { %s2271_s30 = scalar_lea.hbm %s2270_s0, 1  ;;  %p2276_p6 = scmp.lt.s32.totalorder %s2270_s0, %s3271_s11 }
 0x98b   : > { %p2272_p2 = scmp.ne.s32.totalorder %s2270_s0, %s2271_s30  ;;  %p2277_p7 = scmp.lt.s32.totalorder %s2275_s13, %s2271_s30 }
 0x98d   : > { %p2273_p4 = pnand %p2272_p2, %p2517_p3  ;;  %p2278_p8 = por %p2277_p7, %p2276_p6 }
 0x98f   : > { %p2274_p5 = pneg %p2273_p4 }
 0x991   : > { %p2279_p10 = pnand %p2278_p8, %p2274_p5 }
 0x993   : > { %2282 = shalt.err (!%p2279_p10)
}
 0x994   : > { %2139 = dma.vmem_to_hbm [thread:$0]  (%p2517_p3), %s1860_s3, 16, %s1862_s5, %s1849_s23  }
 0x995 PF: > { %s3274_s24 = sld [smem:[#allocation12_spill]] }
 0x996   : > { %s3275_s12 = sld [smem:[#allocation6_spill]] }
 0x99b   : > { %p2145_p11 = scmp.ge.s32.totalorder %s3274_s24, 2 }
 0x99c   : > { %s1873_s17 = sand.u32 1, %s3275_s12  }
 0x99d   : > { %p2142_p12 = pnand %p2145_p11, %p2527_p9  ;;  %s1874_s8 = scalar_lea.sflag [#allocation4], %s1873_s17 }
 0x99f   : > { %p2143_p13 = pneg %p2142_p12 }
 0x9a1   : > { %2316 = dma.done.wait (%p2143_p13), %s1874_s8, 16  }
 0x9a2   : > { %2318 = vsyncadd (%p2143_p13), %s1874_s8, 4294967280  ;;  %s34_s0 = sadd.s32 1, %s3274_s24   ;;  %s3277_s19 = sld [smem:[#allocation7_spill]] }
 0x9a3   : > { %p31_p0 = scmp.ge.s32.totalorder %s34_s0, 6   ;;  %s3278_s26 = sld [smem:[#allocation17_spill]] }
 0x9a4   : > { %s3279_s27 = sld [smem:[#allocation10_spill]]  ;;  %s3283_s2 = smov %s2325_s25 }
 0x9a5   : > { %s3280_s3 = sld [smem:[#allocation11_spill]]  ;;  %33 = sbr.rel (!%p31_p0) target bundleno = 23 (0x17), region = 195 }
 0x9a6   : > { %s3281_s28 = sld [smem:[#allocation13_spill]] }
 0x9a7   : > { %s3282_s29 = sld [smem:[#allocation15_spill]] }
 0x9a8   : > { %s3284_s25 = smov %s3277_s19 }
 0x9aa   :  { %1879 = vsyncpa [#allocation4], 1 }
 0x9ab   :  { %1881 = vsyncpa [#allocation4 + $0x1], 1 }

</bundles_post_ra>
